<compile_context>
chip_gen: v7x
topology: tpu7x:2x2x1
jax: 0.10.0
libtpu: 0.0.40
codegen_flags: <defaults>
</compile_context>

<pallas_src>
import functools
import math

import jax
import jax.numpy as jnp
from jax.experimental import pallas as pl
from jax.experimental.pallas import tpu as pltpu


# ----------------------------------------------------------------------------
# Model configuration
# ----------------------------------------------------------------------------

CFG = dict(num_nodes=8, in_dim=2, out_dim=12,
           residual_channels=32, dilation_channels=32,
           skip_channels=64, end_channels=128,
           kernel_size=2, blocks=2, layers=2)


def _schedule(cfg):
    """Replicates the receptive-field / dilation bookkeeping of __init__."""
    receptive_field = 1
    dilations = []
    for _ in range(cfg["blocks"]):
        additional_scope = cfg["kernel_size"] - 1
        new_dilation = 1
        for _ in range(cfg["layers"]):
            dilations.append(new_dilation)
            new_dilation *= 2
            receptive_field += additional_scope
            additional_scope *= 2
    return receptive_field, dilations


def init_params(key, cfg):
    rc, dc = cfg["residual_channels"], cfg["dilation_channels"]
    sc, ec = cfg["skip_channels"], cfg["end_channels"]
    n = cfg["num_nodes"]
    n_layers = cfg["blocks"] * cfg["layers"]
    support_len = 1                       # supports=None, addaptadj=True -> adaptive only
    gcn_in = (2 * support_len + 1) * dc   # order-2 diffusion: [x, Ax, A^2 x]

    keys = iter(jax.random.split(key, 256))

    def nrm(shape, scale=0.1):
        return scale * jax.random.normal(next(keys), shape, dtype=jnp.float32)

    wfg, bfg, ws, bs, wgc, bgc = [], [], [], [], [], []
    for _ in range(n_layers):
        wf0, wf1, bf_ = nrm((dc, rc)), nrm((dc, rc)), nrm((dc,))
        wg0, wg1, bg_ = nrm((dc, rc)), nrm((dc, rc)), nrm((dc,))
        # pack filter+gate (output rows) and the two temporal taps (K columns)
        # so the whole gated conv is a single K=2*rc matmul per layer
        w_tap0 = jnp.concatenate([wf0, wg0], axis=0)            # (2*dc, rc), early tap
        w_tap1 = jnp.concatenate([wf1, wg1], axis=0)            # (2*dc, rc), late  tap
        wfg.append(jnp.concatenate([w_tap0, w_tap1], axis=1))   # (2*dc, 2*rc)
        bfg.append(jnp.concatenate([bf_, bg_]).reshape(2 * dc, 1))
        ws.append(nrm((sc, dc)))
        bs.append(nrm((sc,)).reshape(sc, 1))
        wgc.append(nrm((rc, gcn_in)))
        bgc.append(nrm((rc,)).reshape(rc, 1))

    return {
        # MemoryModule stand-in: 1x1 projection in_dim -> residual_channels
        "W_mem": nrm((rc, cfg["in_dim"])), "b_mem": nrm((rc,)).reshape(rc, 1),
        # adaptive adjacency node embeddings (randn, as in the reference)
        "nodevec1": jax.random.normal(next(keys), (n, 10), dtype=jnp.float32),
        "nodevec2": jax.random.normal(next(keys), (10, n), dtype=jnp.float32),
        # per-layer weights stacked along a leading layer axis
        "W_fg": jnp.stack(wfg), "b_fg": jnp.stack(bfg),
        "W_s": jnp.stack(ws), "b_s": jnp.stack(bs),
        "W_gc": jnp.stack(wgc), "b_gc": jnp.stack(bgc),
        "W_end1": nrm((ec, sc)), "b_end1": nrm((ec,)).reshape(ec, 1),
        "W_end2": nrm((cfg["out_dim"], ec)),
        "b_end2": nrm((cfg["out_dim"],)).reshape(cfg["out_dim"], 1),
    }


# ----------------------------------------------------------------------------
# Fused Pallas kernel: whole forward trunk, full lane width, one grid step per
# group of batch elements folded into the lane axis.
# ----------------------------------------------------------------------------

def _gcnm_fused_kernel(x_ref, a1_ref, a2_ref, wmem_ref, bmem_ref,
                       wfg_ref, bfg_ref, ws_ref, bs_ref, wgc_ref, bgc_ref,
                       wend1_ref, bend1_ref, wend2_ref, bend2_ref,
                       out_ref, *, dilations, n_nodes, dc, bn_scale):
    f32, bf16 = jnp.float32, jnp.bfloat16
    n = n_nodes

    a1 = a1_ref[...]          # (L, L) bf16: kron(I, adp)       -> order-1 diffusion
    a2 = a2_ref[...]          # (L, L) bf16: kron(I, adp @ adp) -> order-2 diffusion

    # MemoryModule stand-in / start projection: in_dim -> residual_channels.
    x = (jnp.dot(wmem_ref[...], x_ref[0].astype(bf16),
                 preferred_element_type=f32) + bmem_ref[...])         # (rc, L) f32

    skip = None
    for i, d in enumerate(dilations):         # statically unrolled WaveNet trunk
        residual = x                          # (rc, L), valid tail right-aligned
        # Dilated (1,2) taps at full lane width.  Right alignment keeps the late
        # tap (kernel index 1) in place; the early tap (kernel index 0) is one
        # circular lane rotation on the XLU.  Wrapped lanes only ever land in
        # the invalid head region, which is cropped outside the kernel.
        x_early = pltpu.roll(x, shift=d * n, axis=1)
        taps = jnp.concatenate([x_early, x], axis=0).astype(bf16)     # (2*rc, L)
        fg = jnp.dot(wfg_ref[i], taps, preferred_element_type=f32) + bfg_ref[i]
        g = jnp.tanh(fg[:dc]) * jax.nn.sigmoid(fg[dc:])               # (dc, L) f32
        gb = g.astype(bf16)

        # skip 1x1 conv; right alignment turns the temporal crop into a plain add.
        s = jnp.dot(ws_ref[i], gb, preferred_element_type=f32) + bs_ref[i]
        skip = s if skip is None else s + skip

        # gcn_gwnet: order-2 diffusion over the adaptive adjacency.  A and A^2
        # are precomputed block-diagonals -> the two hops are independent MXU
        # ops; the concat + 1x1 mlp is one K=3*dc matmul (dropout = identity).
        xg1 = jnp.dot(gb, a1, preferred_element_type=f32)
        xg2 = jnp.dot(gb, a2, preferred_element_type=f32)
        hcat = jnp.concatenate([g, xg1, xg2], axis=0).astype(bf16)    # (3*dc, L)
        y = jnp.dot(wgc_ref[i], hcat, preferred_element_type=f32) + bgc_ref[i]

        # residual add (no crop: right-aligned) + eval-mode BatchNorm scale.
        x = (y + residual) * bn_scale

    # relu(skip) -> end_conv_1 (+relu) -> end_conv_2, all full lane width;
    # the wrapper crops the valid right-aligned tail of every batch segment.
    sk = jnp.maximum(skip, 0.0).astype(bf16)
    h1 = jnp.maximum(
        jnp.dot(wend1_ref[...], sk, preferred_element_type=f32) + bend1_ref[...],
        0.0)
    out = (jnp.dot(wend2_ref[...], h1.astype(bf16), preferred_element_type=f32)
           + bend2_ref[...])
    out_ref[0] = out


# ----------------------------------------------------------------------------
# Forward pass
# ----------------------------------------------------------------------------

def gcnm_forward(params, inp, x_hist, cfg=CFG):
    receptive_field, dilations = _schedule(cfg)
    bn_scale = 1.0 / math.sqrt(1.0 + 1e-5)    # eval-mode BatchNorm2d default stats

    n = cfg["num_nodes"]
    c_in = cfg["in_dim"]
    dc = cfg["dilation_channels"]
    out_dim = cfg["out_dim"]
    bsz = inp.shape[0]
    bf16 = jnp.bfloat16

    # --- local feature + memory modules (deterministic stand-ins) -----------
    # TODO(synk): LocalFeatureModule / MemoryModule source not provided.
    z = jnp.mean(inp, axis=1)                 # (B, L, D)
    mem = jnp.mean(x_hist, axis=1)            # (B, L, D)
    stacked = jnp.stack([z, mem], axis=1).astype(jnp.float32)   # (B, in_dim, L, D)

    seq_len = stacked.shape[2]
    t0 = max(seq_len, receptive_field)
    if seq_len < receptive_field:             # left-pad time (matches F.pad)
        stacked = jnp.pad(
            stacked, ((0, 0), (0, 0), (receptive_field - seq_len, 0), (0, 0)))

    # ---- lane-dense layout: fold batch into the lane axis -------------------
    # lanes per grid step = group * T0 * N, targeting >= 128 so every vreg is
    # full and the output store is an unmasked vst.  Extra grid steps (large B)
    # shard across both TensorCores on v7x via "parallel" semantics.
    lane_per_b = t0 * n
    group = max(1, min(bsz, 128 // lane_per_b))
    pad_b = (-bsz) % group
    if pad_b:
        stacked = jnp.pad(stacked, ((0, pad_b), (0, 0), (0, 0), (0, 0)))
    b_tot = bsz + pad_b
    num_groups = b_tot // group
    lane = group * lane_per_b

    # (Btot, C, T0, N) -> (num_groups, C, group*T0*N), nodes fastest per batch
    x_in = stacked.reshape(num_groups, group, c_in, lane_per_b)
    x_in = jnp.transpose(x_in, (0, 2, 1, 3)).reshape(num_groups, c_in, lane)

    # adaptive adjacency: softmax(relu(nodevec1 @ nodevec2), dim=1) (tiny -> jnp)
    adp = jax.nn.softmax(
        jax.nn.relu(params["nodevec1"] @ params["nodevec2"]), axis=1)
    # Graph diffusion as block-diagonal matmuls on the (batch, t, n) lane axis.
    # Both A and A@A are precomputed so the in-kernel hops are independent.
    # NOTE: O(lane^2) VMEM (32 KiB bf16 at 128 lanes); if T0*N ever grows past
    # ~1-2K lanes switch to a per-time-block (C*T, N)@(N, N) formulation to
    # respect v7x's 64 MiB VMEM.
    eye = jnp.eye(group * t0, dtype=jnp.float32)
    a1 = jnp.kron(eye, adp).astype(bf16)
    a2 = jnp.kron(eye, adp @ adp).astype(bf16)

    # bf16 operands for every MXU contraction (f32 accumulation); biases and
    # all VPU/EUP math stay f32 (v5e-safe).
    w_args = (a1, a2,
              params["W_mem"].astype(bf16), params["b_mem"],
              params["W_fg"].astype(bf16), params["b_fg"],
              params["W_s"].astype(bf16), params["b_s"],
              params["W_gc"].astype(bf16), params["b_gc"],
              params["W_end1"].astype(bf16), params["b_end1"],
              params["W_end2"].astype(bf16), params["b_end2"])

    def rep(arr):                             # full-array block, grid-replicated
        nd = arr.ndim
        return pl.BlockSpec(arr.shape, lambda g, _nd=nd: (0,) * _nd)

    out_full = pl.pallas_call(
        functools.partial(_gcnm_fused_kernel, dilations=tuple(dilations),
                          n_nodes=n, dc=dc, bn_scale=bn_scale),
        grid=(num_groups,),
        in_specs=[pl.BlockSpec((1, c_in, lane), lambda g: (g, 0, 0))]
                 + [rep(w) for w in w_args],
        out_specs=pl.BlockSpec((1, out_dim, lane), lambda g: (g, 0, 0)),
        out_shape=jax.ShapeDtypeStruct((num_groups, out_dim, lane), jnp.float32),
        compiler_params=pltpu.CompilerParams(
            dimension_semantics=("parallel",)),
    )(x_in, *w_args)

    # Crop the right-aligned valid tail of every batch segment, then lay out as
    # NCHW (B, out_dim, N, T_final) to match the PyTorch module.
    t_final = t0 - sum(dilations)
    out = out_full.reshape(num_groups, out_dim, group, t0, n)
    out = out[:, :, :, t0 - t_final:, :]                        # (ng, O, g, Tf, N)
    out = jnp.transpose(out, (0, 2, 1, 4, 3))                   # (ng, g, O, N, Tf)
    out = out.reshape(b_tot, out_dim, n, t_final)[:bsz]
    if out.shape[-1] == 1:                                      # torch.squeeze(-1)
        out = jnp.squeeze(out, axis=-1)
    return out


# ----------------------------------------------------------------------------
# Main
# ----------------------------------------------------------------------------

if __name__ == "__main__":
    key = jax.random.PRNGKey(0)
    kp, ki, kh = jax.random.split(key, 3)

    params = init_params(kp, CFG)

    B, L, D = 2, 8, CFG["num_nodes"]     # batch, sequence length, num_nodes
    n_tau = 6                            # memory length n*tau
    inp = jax.random.normal(ki, (B, 8, L, D), dtype=jnp.float32)         # (B, 8, L, D)
    x_hist = jax.random.normal(kh, (B, n_tau, L, D), dtype=jnp.float32)  # (B, n*tau, L, D)

    out = jax.jit(gcnm_forward)(params, inp, x_hist)
    out = jax.block_until_ready(out)
    assert out.shape[0] == B and out.shape[1] == CFG["out_dim"] and out.shape[2] == D
    assert bool(jnp.all(jnp.isfinite(out)))
    print("KERNEL_OK")
</pallas_src>

<mosaic_0001>
module attributes {stable_mosaic.version = 11 : i64} {
  func.func @_gcnm_fused_kernel(%arg0: i32, %arg1: memref<1x2x128xf32, #tpu.memory_space<vmem>>, %arg2: memref<128x128xbf16, #tpu.memory_space<vmem>>, %arg3: memref<128x128xbf16, #tpu.memory_space<vmem>>, %arg4: memref<32x2xbf16, #tpu.memory_space<vmem>>, %arg5: memref<32x1xf32, #tpu.memory_space<vmem>>, %arg6: memref<4x64x64xbf16, #tpu.memory_space<vmem>>, %arg7: memref<4x64x1xf32, #tpu.memory_space<vmem>>, %arg8: memref<4x64x32xbf16, #tpu.memory_space<vmem>>, %arg9: memref<4x64x1xf32, #tpu.memory_space<vmem>>, %arg10: memref<4x32x96xbf16, #tpu.memory_space<vmem>>, %arg11: memref<4x32x1xf32, #tpu.memory_space<vmem>>, %arg12: memref<128x64xbf16, #tpu.memory_space<vmem>>, %arg13: memref<128x1xf32, #tpu.memory_space<vmem>>, %arg14: memref<12x128xbf16, #tpu.memory_space<vmem>>, %arg15: memref<12x1xf32, #tpu.memory_space<vmem>>, %arg16: memref<1x12x128xf32, #tpu.memory_space<vmem>>) attributes {dimension_semantics = [#tpu.dimension_semantics<parallel>], iteration_bounds = array<i64: 1>, scalar_prefetch = 0 : i64, scratch_operands = 0 : i64, tpu.core_type = #tpu.core_type<tc>, window_params = [{transform_indices = @transform_0, window_bounds = array<i64: 1, 2, 128>}, {pipeline_mode = #tpu.pipeline_mode<synchronous>, transform_indices = @transform_1, window_bounds = array<i64: 128, 128>}, {pipeline_mode = #tpu.pipeline_mode<synchronous>, transform_indices = @transform_2, window_bounds = array<i64: 128, 128>}, {pipeline_mode = #tpu.pipeline_mode<synchronous>, transform_indices = @transform_3, window_bounds = array<i64: 32, 2>}, {pipeline_mode = #tpu.pipeline_mode<synchronous>, transform_indices = @transform_4, window_bounds = array<i64: 32, 1>}, {pipeline_mode = #tpu.pipeline_mode<synchronous>, transform_indices = @transform_5, window_bounds = array<i64: 4, 64, 64>}, {pipeline_mode = #tpu.pipeline_mode<synchronous>, transform_indices = @transform_6, window_bounds = array<i64: 4, 64, 1>}, {pipeline_mode = #tpu.pipeline_mode<synchronous>, transform_indices = @transform_7, window_bounds = array<i64: 4, 64, 32>}, {pipeline_mode = #tpu.pipeline_mode<synchronous>, transform_indices = @transform_8, window_bounds = array<i64: 4, 64, 1>}, {pipeline_mode = #tpu.pipeline_mode<synchronous>, transform_indices = @transform_9, window_bounds = array<i64: 4, 32, 96>}, {pipeline_mode = #tpu.pipeline_mode<synchronous>, transform_indices = @transform_10, window_bounds = array<i64: 4, 32, 1>}, {pipeline_mode = #tpu.pipeline_mode<synchronous>, transform_indices = @transform_11, window_bounds = array<i64: 128, 64>}, {pipeline_mode = #tpu.pipeline_mode<synchronous>, transform_indices = @transform_12, window_bounds = array<i64: 128, 1>}, {pipeline_mode = #tpu.pipeline_mode<synchronous>, transform_indices = @transform_13, window_bounds = array<i64: 12, 128>}, {pipeline_mode = #tpu.pipeline_mode<synchronous>, transform_indices = @transform_14, window_bounds = array<i64: 12, 1>}, {transform_indices = @transform_15, window_bounds = array<i64: 1, 12, 128>}]} {
    %c0 = arith.constant 0 : index
    %c0_0 = arith.constant 0 : index
    %0 = vector.load %arg2[%c0, %c0_0] : memref<128x128xbf16, #tpu.memory_space<vmem>>, vector<128x128xbf16>
    %c0_1 = arith.constant 0 : index
    %c0_2 = arith.constant 0 : index
    %1 = vector.load %arg3[%c0_1, %c0_2] : memref<128x128xbf16, #tpu.memory_space<vmem>>, vector<128x128xbf16>
    %c0_3 = arith.constant 0 : index
    %c0_4 = arith.constant 0 : index
    %2 = vector.load %arg4[%c0_3, %c0_4] : memref<32x2xbf16, #tpu.memory_space<vmem>>, vector<32x2xbf16>
    %c0_5 = arith.constant 0 : index
    %c0_6 = arith.constant 0 : index
    %c0_7 = arith.constant 0 : index
    %3 = vector.load %arg1[%c0_5, %c0_6, %c0_7] : memref<1x2x128xf32, #tpu.memory_space<vmem>>, vector<1x2x128xf32>
    %4 = vector.shape_cast %3 : vector<1x2x128xf32> to vector<2x128xf32>
    %5 = arith.truncf %4 : vector<2x128xf32> to vector<2x128xbf16>
    %cst = arith.constant dense<0.000000e+00> : vector<32x128xf32>
    %6 = tpu.matmul %2, %5, %cst {dimension_numbers = #tpu.dot_dimension_numbers<[1], [0], [0], [1], [0, 0, 1, 1], [], []>} : vector<32x2xbf16>, vector<2x128xbf16>, vector<32x128xf32> -> vector<32x128xf32>
    %c0_8 = arith.constant 0 : index
    %c0_9 = arith.constant 0 : index
    %7 = vector.load %arg5[%c0_8, %c0_9] : memref<32x1xf32, #tpu.memory_space<vmem>>, vector<32x1xf32>
    %8 = vector.broadcast %7 : vector<32x1xf32> to vector<32x128xf32>
    %9 = arith.addf %6, %8 : vector<32x128xf32>
    %c8_i32 = arith.constant 8 : i32
    %10 = tpu.dynamic_rotate %9 by %c8_i32 dim 1 : vector<32x128xf32>, i32 -> vector<32x128xf32>
    %11 = tpu.concatenate %10, %9 in 0 : vector<32x128xf32>, vector<32x128xf32> -> vector<64x128xf32>
    %12 = arith.truncf %11 : vector<64x128xf32> to vector<64x128xbf16>
    %c0_10 = arith.constant 0 : index
    %c0_11 = arith.constant 0 : index
    %c0_12 = arith.constant 0 : index
    %13 = vector.load %arg6[%c0_10, %c0_11, %c0_12] : memref<4x64x64xbf16, #tpu.memory_space<vmem>>, vector<1x64x64xbf16>
    %14 = vector.shape_cast %13 : vector<1x64x64xbf16> to vector<64x64xbf16>
    %cst_13 = arith.constant dense<0.000000e+00> : vector<64x128xf32>
    %15 = tpu.matmul %14, %12, %cst_13 {dimension_numbers = #tpu.dot_dimension_numbers<[1], [0], [0], [1], [0, 0, 1, 1], [], []>} : vector<64x64xbf16>, vector<64x128xbf16>, vector<64x128xf32> -> vector<64x128xf32>
    %c0_14 = arith.constant 0 : index
    %c0_15 = arith.constant 0 : index
    %c0_16 = arith.constant 0 : index
    %16 = vector.load %arg7[%c0_14, %c0_15, %c0_16] : memref<4x64x1xf32, #tpu.memory_space<vmem>>, vector<1x64x1xf32>
    %17 = vector.shape_cast %16 : vector<1x64x1xf32> to vector<64x1xf32>
    %18 = vector.broadcast %17 : vector<64x1xf32> to vector<64x128xf32>
    %19 = arith.addf %15, %18 : vector<64x128xf32>
    %20 = vector.extract_strided_slice %19 {offsets = [0, 0], sizes = [32, 128], strides = [1, 1]} : vector<64x128xf32> to vector<32x128xf32>
    %21 = math.tanh %20 : vector<32x128xf32>
    %22 = vector.extract_strided_slice %19 {offsets = [32, 0], sizes = [32, 128], strides = [1, 1]} : vector<64x128xf32> to vector<32x128xf32>
    %23 = arith.negf %22 : vector<32x128xf32>
    %24 = math.exp %23 : vector<32x128xf32>
    %cst_17 = arith.constant 1.000000e+00 : f32
    %25 = vector.broadcast %cst_17 : f32 to vector<32x128xf32>
    %26 = arith.addf %25, %24 : vector<32x128xf32>
    %27 = arith.divf %25, %26 : vector<32x128xf32>
    %28 = arith.mulf %21, %27 : vector<32x128xf32>
    %29 = arith.truncf %28 : vector<32x128xf32> to vector<32x128xbf16>
    %c0_18 = arith.constant 0 : index
    %c0_19 = arith.constant 0 : index
    %c0_20 = arith.constant 0 : index
    %30 = vector.load %arg8[%c0_18, %c0_19, %c0_20] : memref<4x64x32xbf16, #tpu.memory_space<vmem>>, vector<1x64x32xbf16>
    %31 = vector.shape_cast %30 : vector<1x64x32xbf16> to vector<64x32xbf16>
    %cst_21 = arith.constant dense<0.000000e+00> : vector<64x128xf32>
    %32 = tpu.matmul %31, %29, %cst_21 {dimension_numbers = #tpu.dot_dimension_numbers<[1], [0], [0], [1], [0, 0, 1, 1], [], []>} : vector<64x32xbf16>, vector<32x128xbf16>, vector<64x128xf32> -> vector<64x128xf32>
    %c0_22 = arith.constant 0 : index
    %c0_23 = arith.constant 0 : index
    %c0_24 = arith.constant 0 : index
    %33 = vector.load %arg9[%c0_22, %c0_23, %c0_24] : memref<4x64x1xf32, #tpu.memory_space<vmem>>, vector<1x64x1xf32>
    %34 = vector.shape_cast %33 : vector<1x64x1xf32> to vector<64x1xf32>
    %35 = vector.broadcast %34 : vector<64x1xf32> to vector<64x128xf32>
    %36 = arith.addf %32, %35 : vector<64x128xf32>
    %cst_25 = arith.constant dense<0.000000e+00> : vector<32x128xf32>
    %37 = tpu.matmul %29, %0, %cst_25 {dimension_numbers = #tpu.dot_dimension_numbers<[1], [0], [0], [1], [0, 0, 1, 1], [], []>} : vector<32x128xbf16>, vector<128x128xbf16>, vector<32x128xf32> -> vector<32x128xf32>
    %cst_26 = arith.constant dense<0.000000e+00> : vector<32x128xf32>
    %38 = tpu.matmul %29, %1, %cst_26 {dimension_numbers = #tpu.dot_dimension_numbers<[1], [0], [0], [1], [0, 0, 1, 1], [], []>} : vector<32x128xbf16>, vector<128x128xbf16>, vector<32x128xf32> -> vector<32x128xf32>
    %39 = tpu.concatenate %28, %37, %38 in 0 : vector<32x128xf32>, vector<32x128xf32>, vector<32x128xf32> -> vector<96x128xf32>
    %40 = arith.truncf %39 : vector<96x128xf32> to vector<96x128xbf16>
    %c0_27 = arith.constant 0 : index
    %c0_28 = arith.constant 0 : index
    %c0_29 = arith.constant 0 : index
    %41 = vector.load %arg10[%c0_27, %c0_28, %c0_29] : memref<4x32x96xbf16, #tpu.memory_space<vmem>>, vector<1x32x96xbf16>
    %42 = vector.shape_cast %41 : vector<1x32x96xbf16> to vector<32x96xbf16>
    %cst_30 = arith.constant dense<0.000000e+00> : vector<32x128xf32>
    %43 = tpu.matmul %42, %40, %cst_30 {dimension_numbers = #tpu.dot_dimension_numbers<[1], [0], [0], [1], [0, 0, 1, 1], [], []>} : vector<32x96xbf16>, vector<96x128xbf16>, vector<32x128xf32> -> vector<32x128xf32>
    %c0_31 = arith.constant 0 : index
    %c0_32 = arith.constant 0 : index
    %c0_33 = arith.constant 0 : index
    %44 = vector.load %arg11[%c0_31, %c0_32, %c0_33] : memref<4x32x1xf32, #tpu.memory_space<vmem>>, vector<1x32x1xf32>
    %45 = vector.shape_cast %44 : vector<1x32x1xf32> to vector<32x1xf32>
    %46 = vector.broadcast %45 : vector<32x1xf32> to vector<32x128xf32>
    %47 = arith.addf %43, %46 : vector<32x128xf32>
    %48 = arith.addf %47, %9 : vector<32x128xf32>
    %cst_34 = arith.constant 0.999994993 : f32
    %49 = vector.broadcast %cst_34 : f32 to vector<32x128xf32>
    %50 = arith.mulf %48, %49 : vector<32x128xf32>
    %c16_i32 = arith.constant 16 : i32
    %51 = tpu.dynamic_rotate %50 by %c16_i32 dim 1 : vector<32x128xf32>, i32 -> vector<32x128xf32>
    %52 = tpu.concatenate %51, %50 in 0 : vector<32x128xf32>, vector<32x128xf32> -> vector<64x128xf32>
    %53 = arith.truncf %52 : vector<64x128xf32> to vector<64x128xbf16>
    %c1 = arith.constant 1 : index
    %c0_35 = arith.constant 0 : index
    %c0_36 = arith.constant 0 : index
    %54 = vector.load %arg6[%c1, %c0_35, %c0_36] : memref<4x64x64xbf16, #tpu.memory_space<vmem>>, vector<1x64x64xbf16>
    %55 = vector.shape_cast %54 : vector<1x64x64xbf16> to vector<64x64xbf16>
    %cst_37 = arith.constant dense<0.000000e+00> : vector<64x128xf32>
    %56 = tpu.matmul %55, %53, %cst_37 {dimension_numbers = #tpu.dot_dimension_numbers<[1], [0], [0], [1], [0, 0, 1, 1], [], []>} : vector<64x64xbf16>, vector<64x128xbf16>, vector<64x128xf32> -> vector<64x128xf32>
    %c1_38 = arith.constant 1 : index
    %c0_39 = arith.constant 0 : index
    %c0_40 = arith.constant 0 : index
    %57 = vector.load %arg7[%c1_38, %c0_39, %c0_40] : memref<4x64x1xf32, #tpu.memory_space<vmem>>, vector<1x64x1xf32>
    %58 = vector.shape_cast %57 : vector<1x64x1xf32> to vector<64x1xf32>
    %59 = vector.broadcast %58 : vector<64x1xf32> to vector<64x128xf32>
    %60 = arith.addf %56, %59 : vector<64x128xf32>
    %61 = vector.extract_strided_slice %60 {offsets = [0, 0], sizes = [32, 128], strides = [1, 1]} : vector<64x128xf32> to vector<32x128xf32>
    %62 = math.tanh %61 : vector<32x128xf32>
    %63 = vector.extract_strided_slice %60 {offsets = [32, 0], sizes = [32, 128], strides = [1, 1]} : vector<64x128xf32> to vector<32x128xf32>
    %64 = arith.negf %63 : vector<32x128xf32>
    %65 = math.exp %64 : vector<32x128xf32>
    %cst_41 = arith.constant 1.000000e+00 : f32
    %66 = vector.broadcast %cst_41 : f32 to vector<32x128xf32>
    %67 = arith.addf %66, %65 : vector<32x128xf32>
    %68 = arith.divf %66, %67 : vector<32x128xf32>
    %69 = arith.mulf %62, %68 : vector<32x128xf32>
    %70 = arith.truncf %69 : vector<32x128xf32> to vector<32x128xbf16>
    %c1_42 = arith.constant 1 : index
    %c0_43 = arith.constant 0 : index
    %c0_44 = arith.constant 0 : index
    %71 = vector.load %arg8[%c1_42, %c0_43, %c0_44] : memref<4x64x32xbf16, #tpu.memory_space<vmem>>, vector<1x64x32xbf16>
    %72 = vector.shape_cast %71 : vector<1x64x32xbf16> to vector<64x32xbf16>
    %cst_45 = arith.constant dense<0.000000e+00> : vector<64x128xf32>
    %73 = tpu.matmul %72, %70, %cst_45 {dimension_numbers = #tpu.dot_dimension_numbers<[1], [0], [0], [1], [0, 0, 1, 1], [], []>} : vector<64x32xbf16>, vector<32x128xbf16>, vector<64x128xf32> -> vector<64x128xf32>
    %c1_46 = arith.constant 1 : index
    %c0_47 = arith.constant 0 : index
    %c0_48 = arith.constant 0 : index
    %74 = vector.load %arg9[%c1_46, %c0_47, %c0_48] : memref<4x64x1xf32, #tpu.memory_space<vmem>>, vector<1x64x1xf32>
    %75 = vector.shape_cast %74 : vector<1x64x1xf32> to vector<64x1xf32>
    %76 = vector.broadcast %75 : vector<64x1xf32> to vector<64x128xf32>
    %77 = arith.addf %73, %76 : vector<64x128xf32>
    %78 = arith.addf %77, %36 : vector<64x128xf32>
    %cst_49 = arith.constant dense<0.000000e+00> : vector<32x128xf32>
    %79 = tpu.matmul %70, %0, %cst_49 {dimension_numbers = #tpu.dot_dimension_numbers<[1], [0], [0], [1], [0, 0, 1, 1], [], []>} : vector<32x128xbf16>, vector<128x128xbf16>, vector<32x128xf32> -> vector<32x128xf32>
    %cst_50 = arith.constant dense<0.000000e+00> : vector<32x128xf32>
    %80 = tpu.matmul %70, %1, %cst_50 {dimension_numbers = #tpu.dot_dimension_numbers<[1], [0], [0], [1], [0, 0, 1, 1], [], []>} : vector<32x128xbf16>, vector<128x128xbf16>, vector<32x128xf32> -> vector<32x128xf32>
    %81 = tpu.concatenate %69, %79, %80 in 0 : vector<32x128xf32>, vector<32x128xf32>, vector<32x128xf32> -> vector<96x128xf32>
    %82 = arith.truncf %81 : vector<96x128xf32> to vector<96x128xbf16>
    %c1_51 = arith.constant 1 : index
    %c0_52 = arith.constant 0 : index
    %c0_53 = arith.constant 0 : index
    %83 = vector.load %arg10[%c1_51, %c0_52, %c0_53] : memref<4x32x96xbf16, #tpu.memory_space<vmem>>, vector<1x32x96xbf16>
    %84 = vector.shape_cast %83 : vector<1x32x96xbf16> to vector<32x96xbf16>
    %cst_54 = arith.constant dense<0.000000e+00> : vector<32x128xf32>
    %85 = tpu.matmul %84, %82, %cst_54 {dimension_numbers = #tpu.dot_dimension_numbers<[1], [0], [0], [1], [0, 0, 1, 1], [], []>} : vector<32x96xbf16>, vector<96x128xbf16>, vector<32x128xf32> -> vector<32x128xf32>
    %c1_55 = arith.constant 1 : index
    %c0_56 = arith.constant 0 : index
    %c0_57 = arith.constant 0 : index
    %86 = vector.load %arg11[%c1_55, %c0_56, %c0_57] : memref<4x32x1xf32, #tpu.memory_space<vmem>>, vector<1x32x1xf32>
    %87 = vector.shape_cast %86 : vector<1x32x1xf32> to vector<32x1xf32>
    %88 = vector.broadcast %87 : vector<32x1xf32> to vector<32x128xf32>
    %89 = arith.addf %85, %88 : vector<32x128xf32>
    %90 = arith.addf %89, %50 : vector<32x128xf32>
    %cst_58 = arith.constant 0.999994993 : f32
    %91 = vector.broadcast %cst_58 : f32 to vector<32x128xf32>
    %92 = arith.mulf %90, %91 : vector<32x128xf32>
    %c8_i32_59 = arith.constant 8 : i32
    %93 = tpu.dynamic_rotate %92 by %c8_i32_59 dim 1 : vector<32x128xf32>, i32 -> vector<32x128xf32>
    %94 = tpu.concatenate %93, %92 in 0 : vector<32x128xf32>, vector<32x128xf32> -> vector<64x128xf32>
    %95 = arith.truncf %94 : vector<64x128xf32> to vector<64x128xbf16>
    %c2 = arith.constant 2 : index
    %c0_60 = arith.constant 0 : index
    %c0_61 = arith.constant 0 : index
    %96 = vector.load %arg6[%c2, %c0_60, %c0_61] : memref<4x64x64xbf16, #tpu.memory_space<vmem>>, vector<1x64x64xbf16>
    %97 = vector.shape_cast %96 : vector<1x64x64xbf16> to vector<64x64xbf16>
    %cst_62 = arith.constant dense<0.000000e+00> : vector<64x128xf32>
    %98 = tpu.matmul %97, %95, %cst_62 {dimension_numbers = #tpu.dot_dimension_numbers<[1], [0], [0], [1], [0, 0, 1, 1], [], []>} : vector<64x64xbf16>, vector<64x128xbf16>, vector<64x128xf32> -> vector<64x128xf32>
    %c2_63 = arith.constant 2 : index
    %c0_64 = arith.constant 0 : index
    %c0_65 = arith.constant 0 : index
    %99 = vector.load %arg7[%c2_63, %c0_64, %c0_65] : memref<4x64x1xf32, #tpu.memory_space<vmem>>, vector<1x64x1xf32>
    %100 = vector.shape_cast %99 : vector<1x64x1xf32> to vector<64x1xf32>
    %101 = vector.broadcast %100 : vector<64x1xf32> to vector<64x128xf32>
    %102 = arith.addf %98, %101 : vector<64x128xf32>
    %103 = vector.extract_strided_slice %102 {offsets = [0, 0], sizes = [32, 128], strides = [1, 1]} : vector<64x128xf32> to vector<32x128xf32>
    %104 = math.tanh %103 : vector<32x128xf32>
    %105 = vector.extract_strided_slice %102 {offsets = [32, 0], sizes = [32, 128], strides = [1, 1]} : vector<64x128xf32> to vector<32x128xf32>
    %106 = arith.negf %105 : vector<32x128xf32>
    %107 = math.exp %106 : vector<32x128xf32>
    %cst_66 = arith.constant 1.000000e+00 : f32
    %108 = vector.broadcast %cst_66 : f32 to vector<32x128xf32>
    %109 = arith.addf %108, %107 : vector<32x128xf32>
    %110 = arith.divf %108, %109 : vector<32x128xf32>
    %111 = arith.mulf %104, %110 : vector<32x128xf32>
    %112 = arith.truncf %111 : vector<32x128xf32> to vector<32x128xbf16>
    %c2_67 = arith.constant 2 : index
    %c0_68 = arith.constant 0 : index
    %c0_69 = arith.constant 0 : index
    %113 = vector.load %arg8[%c2_67, %c0_68, %c0_69] : memref<4x64x32xbf16, #tpu.memory_space<vmem>>, vector<1x64x32xbf16>
    %114 = vector.shape_cast %113 : vector<1x64x32xbf16> to vector<64x32xbf16>
    %cst_70 = arith.constant dense<0.000000e+00> : vector<64x128xf32>
    %115 = tpu.matmul %114, %112, %cst_70 {dimension_numbers = #tpu.dot_dimension_numbers<[1], [0], [0], [1], [0, 0, 1, 1], [], []>} : vector<64x32xbf16>, vector<32x128xbf16>, vector<64x128xf32> -> vector<64x128xf32>
    %c2_71 = arith.constant 2 : index
    %c0_72 = arith.constant 0 : index
    %c0_73 = arith.constant 0 : index
    %116 = vector.load %arg9[%c2_71, %c0_72, %c0_73] : memref<4x64x1xf32, #tpu.memory_space<vmem>>, vector<1x64x1xf32>
    %117 = vector.shape_cast %116 : vector<1x64x1xf32> to vector<64x1xf32>
    %118 = vector.broadcast %117 : vector<64x1xf32> to vector<64x128xf32>
    %119 = arith.addf %115, %118 : vector<64x128xf32>
    %120 = arith.addf %119, %78 : vector<64x128xf32>
    %cst_74 = arith.constant dense<0.000000e+00> : vector<32x128xf32>
    %121 = tpu.matmul %112, %0, %cst_74 {dimension_numbers = #tpu.dot_dimension_numbers<[1], [0], [0], [1], [0, 0, 1, 1], [], []>} : vector<32x128xbf16>, vector<128x128xbf16>, vector<32x128xf32> -> vector<32x128xf32>
    %cst_75 = arith.constant dense<0.000000e+00> : vector<32x128xf32>
    %122 = tpu.matmul %112, %1, %cst_75 {dimension_numbers = #tpu.dot_dimension_numbers<[1], [0], [0], [1], [0, 0, 1, 1], [], []>} : vector<32x128xbf16>, vector<128x128xbf16>, vector<32x128xf32> -> vector<32x128xf32>
    %123 = tpu.concatenate %111, %121, %122 in 0 : vector<32x128xf32>, vector<32x128xf32>, vector<32x128xf32> -> vector<96x128xf32>
    %124 = arith.truncf %123 : vector<96x128xf32> to vector<96x128xbf16>
    %c2_76 = arith.constant 2 : index
    %c0_77 = arith.constant 0 : index
    %c0_78 = arith.constant 0 : index
    %125 = vector.load %arg10[%c2_76, %c0_77, %c0_78] : memref<4x32x96xbf16, #tpu.memory_space<vmem>>, vector<1x32x96xbf16>
    %126 = vector.shape_cast %125 : vector<1x32x96xbf16> to vector<32x96xbf16>
    %cst_79 = arith.constant dense<0.000000e+00> : vector<32x128xf32>
    %127 = tpu.matmul %126, %124, %cst_79 {dimension_numbers = #tpu.dot_dimension_numbers<[1], [0], [0], [1], [0, 0, 1, 1], [], []>} : vector<32x96xbf16>, vector<96x128xbf16>, vector<32x128xf32> -> vector<32x128xf32>
    %c2_80 = arith.constant 2 : index
    %c0_81 = arith.constant 0 : index
    %c0_82 = arith.constant 0 : index
    %128 = vector.load %arg11[%c2_80, %c0_81, %c0_82] : memref<4x32x1xf32, #tpu.memory_space<vmem>>, vector<1x32x1xf32>
    %129 = vector.shape_cast %128 : vector<1x32x1xf32> to vector<32x1xf32>
    %130 = vector.broadcast %129 : vector<32x1xf32> to vector<32x128xf32>
    %131 = arith.addf %127, %130 : vector<32x128xf32>
    %132 = arith.addf %131, %92 : vector<32x128xf32>
    %cst_83 = arith.constant 0.999994993 : f32
    %133 = vector.broadcast %cst_83 : f32 to vector<32x128xf32>
    %134 = arith.mulf %132, %133 : vector<32x128xf32>
    %c16_i32_84 = arith.constant 16 : i32
    %135 = tpu.dynamic_rotate %134 by %c16_i32_84 dim 1 : vector<32x128xf32>, i32 -> vector<32x128xf32>
    %136 = tpu.concatenate %135, %134 in 0 : vector<32x128xf32>, vector<32x128xf32> -> vector<64x128xf32>
    %137 = arith.truncf %136 : vector<64x128xf32> to vector<64x128xbf16>
    %c3 = arith.constant 3 : index
    %c0_85 = arith.constant 0 : index
    %c0_86 = arith.constant 0 : index
    %138 = vector.load %arg6[%c3, %c0_85, %c0_86] : memref<4x64x64xbf16, #tpu.memory_space<vmem>>, vector<1x64x64xbf16>
    %139 = vector.shape_cast %138 : vector<1x64x64xbf16> to vector<64x64xbf16>
    %cst_87 = arith.constant dense<0.000000e+00> : vector<64x128xf32>
    %140 = tpu.matmul %139, %137, %cst_87 {dimension_numbers = #tpu.dot_dimension_numbers<[1], [0], [0], [1], [0, 0, 1, 1], [], []>} : vector<64x64xbf16>, vector<64x128xbf16>, vector<64x128xf32> -> vector<64x128xf32>
    %c3_88 = arith.constant 3 : index
    %c0_89 = arith.constant 0 : index
    %c0_90 = arith.constant 0 : index
    %141 = vector.load %arg7[%c3_88, %c0_89, %c0_90] : memref<4x64x1xf32, #tpu.memory_space<vmem>>, vector<1x64x1xf32>
    %142 = vector.shape_cast %141 : vector<1x64x1xf32> to vector<64x1xf32>
    %143 = vector.broadcast %142 : vector<64x1xf32> to vector<64x128xf32>
    %144 = arith.addf %140, %143 : vector<64x128xf32>
    %145 = vector.extract_strided_slice %144 {offsets = [0, 0], sizes = [32, 128], strides = [1, 1]} : vector<64x128xf32> to vector<32x128xf32>
    %146 = math.tanh %145 : vector<32x128xf32>
    %147 = vector.extract_strided_slice %144 {offsets = [32, 0], sizes = [32, 128], strides = [1, 1]} : vector<64x128xf32> to vector<32x128xf32>
    %148 = arith.negf %147 : vector<32x128xf32>
    %149 = math.exp %148 : vector<32x128xf32>
    %cst_91 = arith.constant 1.000000e+00 : f32
    %150 = vector.broadcast %cst_91 : f32 to vector<32x128xf32>
    %151 = arith.addf %150, %149 : vector<32x128xf32>
    %152 = arith.divf %150, %151 : vector<32x128xf32>
    %153 = arith.mulf %146, %152 : vector<32x128xf32>
    %154 = arith.truncf %153 : vector<32x128xf32> to vector<32x128xbf16>
    %c3_92 = arith.constant 3 : index
    %c0_93 = arith.constant 0 : index
    %c0_94 = arith.constant 0 : index
    %155 = vector.load %arg8[%c3_92, %c0_93, %c0_94] : memref<4x64x32xbf16, #tpu.memory_space<vmem>>, vector<1x64x32xbf16>
    %156 = vector.shape_cast %155 : vector<1x64x32xbf16> to vector<64x32xbf16>
    %cst_95 = arith.constant dense<0.000000e+00> : vector<64x128xf32>
    %157 = tpu.matmul %156, %154, %cst_95 {dimension_numbers = #tpu.dot_dimension_numbers<[1], [0], [0], [1], [0, 0, 1, 1], [], []>} : vector<64x32xbf16>, vector<32x128xbf16>, vector<64x128xf32> -> vector<64x128xf32>
    %c3_96 = arith.constant 3 : index
    %c0_97 = arith.constant 0 : index
    %c0_98 = arith.constant 0 : index
    %158 = vector.load %arg9[%c3_96, %c0_97, %c0_98] : memref<4x64x1xf32, #tpu.memory_space<vmem>>, vector<1x64x1xf32>
    %159 = vector.shape_cast %158 : vector<1x64x1xf32> to vector<64x1xf32>
    %160 = vector.broadcast %159 : vector<64x1xf32> to vector<64x128xf32>
    %161 = arith.addf %157, %160 : vector<64x128xf32>
    %162 = arith.addf %161, %120 : vector<64x128xf32>
    %cst_99 = arith.constant 0.000000e+00 : f32
    %163 = vector.broadcast %cst_99 : f32 to vector<64x128xf32>
    %164 = arith.maximumf %162, %163 : vector<64x128xf32>
    %165 = arith.truncf %164 : vector<64x128xf32> to vector<64x128xbf16>
    %c0_100 = arith.constant 0 : index
    %c0_101 = arith.constant 0 : index
    %166 = vector.load %arg12[%c0_100, %c0_101] : memref<128x64xbf16, #tpu.memory_space<vmem>>, vector<128x64xbf16>
    %cst_102 = arith.constant dense<0.000000e+00> : vector<128x128xf32>
    %167 = tpu.matmul %166, %165, %cst_102 {dimension_numbers = #tpu.dot_dimension_numbers<[1], [0], [0], [1], [0, 0, 1, 1], [], []>} : vector<128x64xbf16>, vector<64x128xbf16>, vector<128x128xf32> -> vector<128x128xf32>
    %c0_103 = arith.constant 0 : index
    %c0_104 = arith.constant 0 : index
    %168 = vector.load %arg13[%c0_103, %c0_104] : memref<128x1xf32, #tpu.memory_space<vmem>>, vector<128x1xf32>
    %169 = vector.broadcast %168 : vector<128x1xf32> to vector<128x128xf32>
    %170 = arith.addf %167, %169 : vector<128x128xf32>
    %cst_105 = arith.constant 0.000000e+00 : f32
    %171 = vector.broadcast %cst_105 : f32 to vector<128x128xf32>
    %172 = arith.maximumf %170, %171 : vector<128x128xf32>
    %c0_106 = arith.constant 0 : index
    %c0_107 = arith.constant 0 : index
    %173 = vector.load %arg14[%c0_106, %c0_107] : memref<12x128xbf16, #tpu.memory_space<vmem>>, vector<12x128xbf16>
    %174 = arith.truncf %172 : vector<128x128xf32> to vector<128x128xbf16>
    %cst_108 = arith.constant dense<0.000000e+00> : vector<12x128xf32>
    %175 = tpu.matmul %173, %174, %cst_108 {dimension_numbers = #tpu.dot_dimension_numbers<[1], [0], [0], [1], [0, 0, 1, 1], [], []>} : vector<12x128xbf16>, vector<128x128xbf16>, vector<12x128xf32> -> vector<12x128xf32>
    %c0_109 = arith.constant 0 : index
    %c0_110 = arith.constant 0 : index
    %176 = vector.load %arg15[%c0_109, %c0_110] : memref<12x1xf32, #tpu.memory_space<vmem>>, vector<12x1xf32>
    %177 = vector.broadcast %176 : vector<12x1xf32> to vector<12x128xf32>
    %178 = arith.addf %175, %177 : vector<12x128xf32>
    %c0_111 = arith.constant 0 : index
    %c0_112 = arith.constant 0 : index
    %c0_113 = arith.constant 0 : index
    %179 = vector.load %arg16[%c0_111, %c0_112, %c0_113] : memref<1x12x128xf32, #tpu.memory_space<vmem>>, vector<1x12x128xf32>
    %180 = vector.shape_cast %179 : vector<1x12x128xf32> to vector<12x128xf32>
    %181 = vector.shape_cast %178 : vector<12x128xf32> to vector<1x12x128xf32>
    tpu.vector_store %arg16[%c0_111, %c0_112, %c0_113], %181 {strides = array<i32>} : memref<1x12x128xf32, #tpu.memory_space<vmem>>, vector<1x12x128xf32>,
    return
  }
  func.func @transform_0(%arg0: i32) -> (i32, i32, i32) {
    %c0_i32 = arith.constant 0 : i32
    %c0_i32_0 = arith.constant 0 : i32
    %c0_i32_1 = arith.constant 0 : i32
    return %arg0, %c0_i32, %c0_i32_0 : i32, i32, i32
  }
  func.func @transform_1(%arg0: i32) -> (i32, i32) {
    %c0_i32 = arith.constant 0 : i32
    %c0_i32_0 = arith.constant 0 : i32
    %c0_i32_1 = arith.constant 0 : i32
    return %c0_i32, %c0_i32_0 : i32, i32
  }
  func.func @transform_2(%arg0: i32) -> (i32, i32) {
    %c0_i32 = arith.constant 0 : i32
    %c0_i32_0 = arith.constant 0 : i32
    %c0_i32_1 = arith.constant 0 : i32
    return %c0_i32, %c0_i32_0 : i32, i32
  }
  func.func @transform_3(%arg0: i32) -> (i32, i32) {
    %c0_i32 = arith.constant 0 : i32
    %c0_i32_0 = arith.constant 0 : i32
    %c0_i32_1 = arith.constant 0 : i32
    return %c0_i32, %c0_i32_0 : i32, i32
  }
  func.func @transform_4(%arg0: i32) -> (i32, i32) {
    %c0_i32 = arith.constant 0 : i32
    %c0_i32_0 = arith.constant 0 : i32
    %c0_i32_1 = arith.constant 0 : i32
    return %c0_i32, %c0_i32_0 : i32, i32
  }
  func.func @transform_5(%arg0: i32) -> (i32, i32, i32) {
    %c0_i32 = arith.constant 0 : i32
    %c0_i32_0 = arith.constant 0 : i32
    %c0_i32_1 = arith.constant 0 : i32
    %c0_i32_2 = arith.constant 0 : i32
    return %c0_i32, %c0_i32_0, %c0_i32_1 : i32, i32, i32
  }
  func.func @transform_6(%arg0: i32) -> (i32, i32, i32) {
    %c0_i32 = arith.constant 0 : i32
    %c0_i32_0 = arith.constant 0 : i32
    %c0_i32_1 = arith.constant 0 : i32
    %c0_i32_2 = arith.constant 0 : i32
    return %c0_i32, %c0_i32_0, %c0_i32_1 : i32, i32, i32
  }
  func.func @transform_7(%arg0: i32) -> (i32, i32, i32) {
    %c0_i32 = arith.constant 0 : i32
    %c0_i32_0 = arith.constant 0 : i32
    %c0_i32_1 = arith.constant 0 : i32
    %c0_i32_2 = arith.constant 0 : i32
    return %c0_i32, %c0_i32_0, %c0_i32_1 : i32, i32, i32
  }
  func.func @transform_8(%arg0: i32) -> (i32, i32, i32) {
    %c0_i32 = arith.constant 0 : i32
    %c0_i32_0 = arith.constant 0 : i32
    %c0_i32_1 = arith.constant 0 : i32
    %c0_i32_2 = arith.constant 0 : i32
    return %c0_i32, %c0_i32_0, %c0_i32_1 : i32, i32, i32
  }
  func.func @transform_9(%arg0: i32) -> (i32, i32, i32) {
    %c0_i32 = arith.constant 0 : i32
    %c0_i32_0 = arith.constant 0 : i32
    %c0_i32_1 = arith.constant 0 : i32
    %c0_i32_2 = arith.constant 0 : i32
    return %c0_i32, %c0_i32_0, %c0_i32_1 : i32, i32, i32
  }
  func.func @transform_10(%arg0: i32) -> (i32, i32, i32) {
    %c0_i32 = arith.constant 0 : i32
    %c0_i32_0 = arith.constant 0 : i32
    %c0_i32_1 = arith.constant 0 : i32
    %c0_i32_2 = arith.constant 0 : i32
    return %c0_i32, %c0_i32_0, %c0_i32_1 : i32, i32, i32
  }
  func.func @transform_11(%arg0: i32) -> (i32, i32) {
    %c0_i32 = arith.constant 0 : i32
    %c0_i32_0 = arith.constant 0 : i32
    %c0_i32_1 = arith.constant 0 : i32
    return %c0_i32, %c0_i32_0 : i32, i32
  }
  func.func @transform_12(%arg0: i32) -> (i32, i32) {
    %c0_i32 = arith.constant 0 : i32
    %c0_i32_0 = arith.constant 0 : i32
    %c0_i32_1 = arith.constant 0 : i32
    return %c0_i32, %c0_i32_0 : i32, i32
  }
  func.func @transform_13(%arg0: i32) -> (i32, i32) {
    %c0_i32 = arith.constant 0 : i32
    %c0_i32_0 = arith.constant 0 : i32
    %c0_i32_1 = arith.constant 0 : i32
    return %c0_i32, %c0_i32_0 : i32, i32
  }
  func.func @transform_14(%arg0: i32) -> (i32, i32) {
    %c0_i32 = arith.constant 0 : i32
    %c0_i32_0 = arith.constant 0 : i32
    %c0_i32_1 = arith.constant 0 : i32
    return %c0_i32, %c0_i32_0 : i32, i32
  }
  func.func @transform_15(%arg0: i32) -> (i32, i32, i32) {
    %c0_i32 = arith.constant 0 : i32
    %c0_i32_0 = arith.constant 0 : i32
    %c0_i32_1 = arith.constant 0 : i32
    return %arg0, %c0_i32, %c0_i32_0 : i32, i32, i32
  }
}

</mosaic_0001>

<bundles_post_ra>
// kernel: gcnm_forward.1
= control target key start
LH: loop header
LB: loop body
LE: loop exit
PB: predicated region body
PF: predicated region fallthrough
CT: control target
= control target key end

     0   :  { %vm130_vm0 = vcmask 1040384   ;;  %vm123_vm1 = vcmask 15360   ;;  %v3723_v1 = vmov 0   ;;  %vm271_vm2 = vcmask 523264   ;;  %s3725_s22 = smov 16   ;;  %s4575_s0 = inlined_call_operand.vmem [shape: f32[1,2,128], index: 0, kind: input, shape index: {}]   ;;  %s4576_s3 = inlined_call_operand.vmem [shape: bf16[32,2], index: 3, kind: input, shape index: {}]   ;;  %s4577_s4 = inlined_call_operand.vmem [shape: f32[32,1], index: 4, kind: input, shape index: {}]   ;;  %s4578_s6 = inlined_call_operand.vmem [shape: f32[4,64,1], index: 6, kind: input, shape index: {}]   ;;  %s4579_s5 = inlined_call_operand.vmem [shape: bf16[4,64,64], index: 5, kind: input, shape index: {}]   ;;  %s4580_s10 = inlined_call_operand.vmem [shape: f32[4,32,1], index: 10, kind: input, shape index: {}]   ;;  %s4581_s2 = inlined_call_operand.vmem [shape: bf16[128,128], index: 2, kind: input, shape index: {}]   ;;  %s4582_s7 = inlined_call_operand.vmem [shape: bf16[4,64,32], index: 7, kind: input, shape index: {}]   ;;  %s4583_s1 = inlined_call_operand.vmem [shape: bf16[128,128], index: 1, kind: input, shape index: {}]   ;;  %s4584_s9 = inlined_call_operand.vmem [shape: bf16[4,32,96], index: 9, kind: input, shape index: {}]   ;;  %s4585_s8 = inlined_call_operand.vmem [shape: f32[4,64,1], index: 8, kind: input, shape index: {}]   ;;  %s4586_s12 = inlined_call_operand.vmem [shape: f32[128,1], index: 12, kind: input, shape index: {}]   ;;  %s4587_s14 = inlined_call_operand.vmem [shape: f32[12,1], index: 14, kind: input, shape index: {}]   ;;  %s4588_s11 = inlined_call_operand.vmem [shape: bf16[128,64], index: 11, kind: input, shape index: {}]   ;;  %s4589_s13 = inlined_call_operand.vmem [shape: bf16[12,128], index: 13, kind: input, shape index: {}]   ;;  %s4590_s15 = inlined_call_operand.vmem [shape: f32[1,12,128], index: 15, kind: output, shape index: {}]  }
   0x1   :  { %v87_v0 = vld [vmem:[%s4575_s0] sm:$0x3]  ;;  %3512 = vset.pattern.permute.xlu0 %v3723_v1  ;;  %3513 = vset.pattern.permute.xlu1 %v3723_v1  ;;  %v91_v5 = vld [vmem:[%s4577_s4 + $0x10] sm:$0xff]  ;;  %v3555_v7 = vld [vmem:[%s4576_s3 + $0x8] sm:$0xff]   ;;  %vm459_vm3 = vcmask 261120   ;;  %vm773_vm4 = vcmask 785408  }
   0x2   :  { %v88_v2 = vpack.c.bf16 %v87_v0, %v87_v0  ;;  %v3554_v3 = vld [vmem:[%s4576_s3] sm:$0xff]   ;;  %105 = vperm.xlu1 %3513, %v91_v5   ;;  %v90_v8 = vld [vmem:[%s4577_s4 + $0x8] sm:$0xff]  ;;  %v92_v9 = vld [vmem:[%s4577_s4 + $0x18] sm:$0xff]  ;;  %s3724_s3 = smov 8   ;;  %vm3727_vm5 = vmmov 0  }
   0x3   :  { %v89_v4 = vld [vmem:[%s4577_s4] sm:$0xff]  ;;  %3122 = vmatprep.mubr.msk.bf16.mxu0 %vm123_vm1, %v3554_v3  ;;  %v208_v24 = vld [vmem:[%s4578_s6 + $0x28] sm:$0xff]  ;;  %v210_v26 = vld [vmem:[%s4578_s6 + $0x38] sm:$0xff] }
   0x4   :  { %3506 = vmatprep.subr.msk.bf16.mxu0 %vm130_vm0, %v88_v2  ;;  %v132_v6 = vsel %vm130_vm0, %v88_v2, 0  ;;  %95 = vperm.xlu0 %3512, %v89_v4   ;;  %v207_v25 = vld [vmem:[%s4578_s6 + $0x20] sm:$0xff]  ;;  %v209_v28 = vld [vmem:[%s4578_s6 + $0x30] sm:$0xff]  ;;  %v204_v29 = vld [vmem:[%s4578_s6 + $0x8] sm:$0xff] }
   0x5   :  { %3121 = vmatpush3.bf16.msra.mxu0 %v132_v6  ;;  %v3556_v27 = vld [vmem:[%s4579_s5] sm:$0xff]   ;;  %v206_v31 = vld [vmem:[%s4578_s6 + $0x18] sm:$0xff]  ;;  %v205_v32 = vld [vmem:[%s4578_s6 + $0x10] sm:$0xff] }
   0x6   :  { %110 = vperm.xlu1 %3513, %v92_v9   ;;  %3134 = vmatprep.mubr.msk.bf16.mxu1 %vm271_vm2, %v3556_v27  ;;  %v203_v30 = vld [vmem:[%s4578_s6] sm:$0xff]  ;;  %v740_v33 = vld [vmem:[%s4580_s10 + $0x8] sm:$0xff]  ;;  %v742_v35 = vld [vmem:[%s4580_s10 + $0x18] sm:$0xff] }
   0x7   :  { %v739_v34 = vld [vmem:[%s4580_s10] sm:$0xff]  ;;  %v741_v36 = vld [vmem:[%s4580_s10 + $0x10] sm:$0xff]  ;;  %v3557_v47 = vld [vmem:[%s4579_s5 + $0x8] sm:$0xff]  }
   0x8   :  { %3123 = vmatmul.mubr.msk.bf16.vlgmr.msra.gmra.mrb[0].mxu0 %vm123_vm1, %v3555_v7  ;;  %100 = vperm.xlu0 %3512, %v90_v8   ;;  %v3558_v48 = vld [vmem:[%s4579_s5 + $0x10] sm:$0xff]   ;;  %v3559_v49 = vld [vmem:[%s4579_s5 + $0x18] sm:$0xff]   ;;  %v3904_v50 = vld [vmem:[%s4581_s2] sm:$0xff]  }
   0x9   :  { %v3911_v51 = vld [vmem:[%s4581_s2 + $0x8] sm:$0xff]   ;;  %v3918_v52 = vld [vmem:[%s4581_s2 + $0x10] sm:$0xff]   ;;  %v3925_v53 = vld [vmem:[%s4581_s2 + $0x18] sm:$0xff]  }
   0xa   :  { %v3932_v54 = vld [vmem:[%s4581_s2 + $0x20] sm:$0xff]   ;;  %v3939_v55 = vld [vmem:[%s4581_s2 + $0x28] sm:$0xff]   ;;  %v3946_v56 = vld [vmem:[%s4581_s2 + $0x30] sm:$0xff]  }
   0xb   :  { %v3953_v57 = vld [vmem:[%s4581_s2 + $0x38] sm:$0xff]   ;;  %v3568_v58 = vld [vmem:[%s4582_s7] sm:$0xff]  }
   0xc   :  { %3146 = vmatprep.mubr.msk.bf16.mxu0 %vm459_vm3, %v3568_v58  ;;  %v3569_v58 = vld [vmem:[%s4582_s7 + $0x8] sm:$0xff]  }
  0x81   :  { %v106_v10 = vpop.permute.xlu1 %105 }
  0x83   :  { %v96_v11 = vpop.permute.xlu0 %95 }
  0x85   :  { %v111_v13 = vpop.permute.xlu1 %110 }
  0x87   :  { %v101_v16 = vpop.permute.xlu0 %100 }
  0xdb   :  { %v3124_v12 = vpop.f32.mrb[0].mxu0 }
  0xdc   :  { %v168_v14 = vpop.f32.mrb[1].mxu0  ;;  %v3831_v17 = vadd.f32 %v3124_v12, %v106_v10 }
  0xdd   :  { %v3125_v15 = vpop.f32.mrb[2].mxu0  ;;  %v3835_v20 = vadd.f32 %v168_v14, %v96_v11 }
  0xde   :  { %v3833_v18 = vadd.f32 %v3125_v15, %v111_v13  ;;  %v171_v19 = vpop.f32.mrb[3].mxu0 }
  0xdf   :  { %v3837_v21 = vadd.f32 %v171_v19, %v101_v16 }
  0xe0   :  { %v3519_v22 = vpack.i.bf16 %v3833_v18, %v3831_v17  ;;  %v194_v46 = vpack.c.bf16 %v3833_v18, %v3831_v17 }
  0xe1   :  { %v3514_v23 = vpack.i.bf16 %v3837_v21, %v3835_v20  ;;  %v193_v45 = vpack.c.bf16 %v3837_v21, %v3835_v20 }
  0xe2   :  { %3520 = vrot.lane.b32.xlu1 %v3519_v22, %s3724_s3 }
  0xe3   :  { %3515 = vrot.lane.b32.xlu0 %v3514_v23, %s3724_s3 }
  0xe6   :  { %238 = vperm.xlu1 %3513, %v208_v24  }
  0xe7   :  { %233 = vperm.xlu0 %3512, %v207_v25  }
  0xea   :  { %248 = vperm.xlu1 %3513, %v210_v26  }
  0xeb   :  { %243 = vperm.xlu0 %3512, %v209_v28  }
  0xee   :  { %218 = vperm.xlu1 %3513, %v204_v29  }
  0xef   :  { %213 = vperm.xlu0 %3512, %v203_v30  }
  0xf2   :  { %228 = vperm.xlu1 %3513, %v206_v31  }
  0xf3   :  { %223 = vperm.xlu0 %3512, %v205_v32  }
  0xf6   :  { %750 = vperm.xlu1 %3513, %v740_v33  }
  0xf7   :  { %745 = vperm.xlu0 %3512, %v739_v34  }
  0xfa   :  { %760 = vperm.xlu1 %3513, %v742_v35  }
  0xfb   :  { %755 = vperm.xlu0 %3512, %v741_v36  }
 0x154   :  { %v3521_v37 = vpop.permute.xlu1 %3520 }
 0x155   :  { %v3516_v38 = vpop.permute.xlu0 %3515  ;;  %v3523_v39 = vunpack.i.h.bf16 %v3521_v37  ;;  %v3522_v40 = vunpack.i.l.bf16 %v3521_v37 }
 0x156   :  { %v3518_v41 = vunpack.i.h.bf16 %v3516_v38  ;;  %v3517_v42 = vunpack.i.l.bf16 %v3516_v38 }
 0x157   :  { %v192_v44 = vpack.c.bf16 %v3523_v39, %v3522_v40 }
 0x158   :  { %v191_v43 = vpack.c.bf16 %v3518_v41, %v3517_v42 }
 0x15a   :  { %3126 = vmatprep.subr.bf16.mxu1 %v191_v43 }
 0x15b   :  { %3127 = vmatpush3.bf16.msra.mxu1 %v191_v43 }
 0x15c   :  { %3128 = vmatprep.subr.bf16.mxu1 %v192_v44 }
 0x15f   :  { %3129 = vmatpush3.bf16.msra.mxu1 %v192_v44 }
 0x160   :  { %3130 = vmatprep.subr.bf16.mxu1 %v193_v45 }
 0x163   :  { %3131 = vmatpush3.bf16.msra.mxu1 %v193_v45 }
 0x164   :  { %3132 = vmatprep.subr.bf16.mxu1 %v194_v46 }
 0x165   :  { %v239_v61 = vpop.permute.xlu1 %238 }
 0x166   :  { %v234_v59 = vpop.permute.xlu0 %233 }
 0x167   :  { %3133 = vmatpush3.bf16.msra.mxu1 %v194_v46 }
 0x168   :  { %3174 = vmatprep.subr.bf16.mxu1 %v3904_v50 }
 0x169   :  { %v249_v2 = vpop.permute.xlu1 %248 }
 0x16a   :  { %3135 = vmatmul.mubr.msk.bf16.vlgmr.msra.gmra.mrb[0].mxu1 %vm271_vm2, %v3557_v47  ;;  %v244_v1 = vpop.permute.xlu0 %243 }
 0x16b   :  { %3138 = vmatprep.mubr.msk.bf16.mxu1 %vm271_vm2, %v3558_v48  ;;  %3175 = vmatpush3.bf16.msra.mxu1 %v3904_v50 }
 0x16c   :  { %3176 = vmatprep.subr.bf16.mxu1 %v3911_v51 }
 0x16d   :  { %v219_v14 = vpop.permute.xlu1 %218 }
 0x16e   :  { %v214_v8 = vpop.permute.xlu0 %213 }
 0x16f   :  { %3177 = vmatpush3.bf16.msra.mxu1 %v3911_v51 }
 0x170   :  { %3178 = vmatprep.subr.bf16.mxu1 %v3918_v52 }
 0x171   :  { %v229_v23 = vpop.permute.xlu1 %228 }
 0x172   :  { %3139 = vmatmul.mubr.msk.bf16.gmra.mrb[4].mxu1 %vm271_vm2, %v3559_v49  ;;  %v224_v19 = vpop.permute.xlu0 %223  ;;  %v3964_v49 = vld [vmem:[%s4583_s1] sm:$0xff]  }
 0x173   :  { %3179 = vmatpush3.bf16.msra.mxu1 %v3918_v52 }
 0x174   :  { %3180 = vmatprep.subr.bf16.mxu1 %v3925_v53 }
 0x177   :  { %3181 = vmatpush3.bf16.msra.mxu1 %v3925_v53 }
 0x178   :  { %3182 = vmatprep.subr.bf16.mxu1 %v3932_v54 }
 0x17b   :  { %3183 = vmatpush3.bf16.msra.mxu1 %v3932_v54 }
 0x17c   :  { %3184 = vmatprep.subr.bf16.mxu1 %v3939_v55 }
 0x17f   :  { %3185 = vmatpush3.bf16.msra.mxu1 %v3939_v55 }
 0x180   :  { %3186 = vmatprep.subr.bf16.mxu1 %v3946_v56 }
 0x183   :  { %3187 = vmatpush3.bf16.msra.mxu1 %v3946_v56 }
 0x184   :  { %3188 = vmatprep.subr.bf16.mxu1 %v3953_v57 }
 0x187   :  { %3189 = vmatpush3.bf16.msra.mxu1 %v3953_v57 }
 0x23d   :  { %v3136_v60 = vpop.f32.mrb[0].mxu1 }
 0x23e   :  { %v318_v62 = vpop.f32.mrb[1].mxu1  ;;  %v327_v22 = vadd.f32 %v3136_v60, %v224_v19  ;;  %v3976_v60 = vld [vmem:[%s4583_s1 + $0x8] sm:$0xff]  }
 0x23f   :  { %v3137_v63 = vpop.f32.mrb[2].mxu1  ;;  %v319_v24 = vadd.f32 %v318_v62, %v214_v8  ;;  %v3573_v62 = vld [vmem:[%s4582_s7 + $0x18] sm:$0xff]   ;;  %v3581_v19 = vld [vmem:[%s4584_s9 + $0x8] sm:$0xff]  }
 0x240   :  { %v321_v0 = vpop.f32.mrb[3].mxu1  ;;  %v330_v25 = vadd.f32 %v3137_v63, %v229_v23  ;;  %v3995_v63 = vld [vmem:[%s4583_s1 + $0x18] sm:$0xff]   ;;  %v751_v23 = vpop.permute.xlu1 %750 }
 0x241   :  { %v322_v26 = vadd.f32 %v321_v0, %v219_v14  ;;  %v4003_v0 = vld [vmem:[%s4583_s1 + $0x20] sm:$0xff]  }
 0x245   :  { %v3140_v3 = vpop.f32.mrb[4].mxu1 }
 0x246   :  { %v343_v4 = vadd.f32 %v3140_v3, %v244_v1  ;;  %v334_v5 = vpop.f32.mrb[5].mxu1  ;;  %v4010_v1 = vld [vmem:[%s4583_s1 + $0x28] sm:$0xff]   ;;  %v4024_v3 = vld [vmem:[%s4583_s1 + $0x38] sm:$0xff]  }
 0x247   :  { %v335_v6 = vadd.f32 %v334_v5, %v234_v59  ;;  %v3141_v7 = vpop.f32.mrb[6].mxu1  ;;  %v3572_v59 = vld [vmem:[%s4582_s7 + $0x10] sm:$0xff]  }
 0x248   :  { %v2729_v9 = vmul.f32 -1.442695, %v343_v4  ;;  %v346_v10 = vadd.f32 %v3141_v7, %v249_v2  ;;  %v337_v11 = vpop.f32.mrb[7].mxu1  ;;  %v4017_v2 = vld [vmem:[%s4583_s1 + $0x30] sm:$0xff]   ;;  %v3580_v4 = vld [vmem:[%s4584_s9] sm:$0xff]  }
 0x249   :  { %v2727_v12 = vmul.f32 -1.442695, %v335_v6  ;;  %v338_v13 = vadd.f32 %v337_v11, %v239_v61  ;;  %v3985_v61 = vld [vmem:[%s4583_s1 + $0x10] sm:$0xff]  }
 0x24a   :  { %3619 = vpow2.f32 %v2729_v9  ;;  %v2730_v15 = vmul.f32 -1.442695, %v346_v10 }
 0x24b   :  { %3621 = vpow2.f32 %v2727_v12  ;;  %v2728_v16 = vmul.f32 -1.442695, %v338_v13 }
 0x24c   :  { %3623 = vpow2.f32 %v2730_v15 }
 0x24d   :  { %3625 = vpow2.f32 %v2728_v16 }
 0x24e   :  { %3627 = vtanh.f32 %v327_v22  ;;  %v746_v22 = vpop.permute.xlu0 %745 }
 0x24f   :  { %3629 = vtanh.f32 %v319_v24 }
 0x250   :  { %3631 = vtanh.f32 %v330_v25 }
 0x251   :  { %3633 = vtanh.f32 %v322_v26 }
 0x252   :  { %v756_v24 = vpop.permute.xlu0 %755 }
 0x254   :  { %v3620_v27 = vpop.eup %3619 }
 0x255   :  { %v3622_v28 = vpop.eup %3621  ;;  %v367_v29 = vadd.f32 1.0, %v3620_v27 }
 0x256   :  { %v3624_v30 = vpop.eup %3623  ;;  %v365_v31 = vadd.f32 1.0, %v3622_v28  ;;  %v761_v28 = vpop.permute.xlu1 %760 }
 0x257   :  { %v3626_v32 = vpop.eup %3625  ;;  %3635 = vrcp.f32 %v367_v29  ;;  %v368_v33 = vadd.f32 1.0, %v3624_v30 }
 0x258   :  { %3637 = vrcp.f32 %v365_v31  ;;  %v366_v34 = vadd.f32 1.0, %v3626_v32  ;;  %v3628_v35 = vpop.eup %3627 }
 0x259   :  { %3639 = vrcp.f32 %v368_v33  ;;  %v3630_v36 = vpop.eup %3629 }
 0x25a   :  { %3641 = vrcp.f32 %v366_v34  ;;  %v3632_v37 = vpop.eup %3631 }
 0x25b   :  { %v3634_v38 = vpop.eup %3633 }
 0x261   :  { %v3636_v39 = vpop.eup %3635 }
 0x262   :  { %v3638_v40 = vpop.eup %3637  ;;  %v379_v41 = vmul.f32 %v3636_v39, %v3628_v35 }
 0x263   :  { %v3640_v42 = vpop.eup %3639  ;;  %v377_v43 = vmul.f32 %v3638_v40, %v3630_v36 }
 0x264   :  { %v3642_v44 = vpop.eup %3641  ;;  %v380_v45 = vmul.f32 %v3640_v42, %v3632_v37 }
 0x265   :  { %v378_v46 = vmul.f32 %v3642_v44, %v3634_v38  ;;  %v2773_v44 = vld [vmem:[%s4578_s6 + $0x70] sm:$0xff] }
 0x266   :  { %v382_v47 = vpack.c.bf16 %v380_v45, %v379_v41  ;;  %v2768_v45 = vld [vmem:[%s4578_s6 + $0x48] sm:$0xff] }
 0x267   :  { %v381_v48 = vpack.c.bf16 %v378_v46, %v377_v43  ;;  %v3582_v43 = vld [vmem:[%s4579_s5 + $0x20] sm:$0xff]  }
 0x268   :  { %v2767_v46 = vld [vmem:[%s4578_s6 + $0x40] sm:$0xff] }
 0x269   :  { %3142 = vmatprep.subr.bf16.mxu0 %v381_v48  ;;  %3190 = vmatprep.mubr.bf16.mxu1 %v381_v48 }
 0x26a   :  { %3143 = vmatpush3.bf16.msra.mxu0 %v381_v48  ;;  %3191 = vmatmul.mubr.bf16.vlgmr.msra.gmra.mrb[8].mxu1 %v382_v47 }
 0x26b   :  { %3144 = vmatprep.subr.bf16.mxu0 %v382_v47  ;;  %3218 = vmatprep.mubr.msk.bf16.mxu1 %vm271_vm2, %v3582_v43 }
 0x26e   :  { %3145 = vmatpush3.bf16.msra.mxu0 %v382_v47 }
 0x26f   :  { %3154 = vmatprep.subr.bf16.mxu0 %v3964_v49 }
 0x271   :  { %3147 = vmatmul.mubr.msk.bf16.vlgmr.msra.gmra.mrb[4].mxu0 %vm459_vm3, %v3569_v58  ;;  %v2816_v58 = vld [vmem:[%s4580_s10 + $0x28] sm:$0xff] }
 0x272   :  { %3155 = vmatpush3.bf16.msra.mxu0 %v3964_v49  ;;  %3150 = vmatprep.mubr.msk.bf16.mxu0 %vm459_vm3, %v3572_v59  ;;  %v2815_v59 = vld [vmem:[%s4580_s10 + $0x20] sm:$0xff] }
 0x273   :  { %3156 = vmatprep.subr.bf16.mxu0 %v3976_v60 }
 0x276   :  { %3157 = vmatpush3.bf16.msra.mxu0 %v3976_v60 }
 0x277   :  { %3158 = vmatprep.subr.bf16.mxu0 %v3985_v61 }
 0x279   :  { %3151 = vmatmul.mubr.msk.bf16.gmra.mrb[8].mxu0 %vm459_vm3, %v3573_v62  ;;  %v2818_v62 = vld [vmem:[%s4580_s10 + $0x38] sm:$0xff] }
 0x27a   :  { %3159 = vmatpush3.bf16.msra.mxu0 %v3985_v61  ;;  %3170 = vmatprep.mubr.bf16.mxu0 %v381_v48 }
 0x27b   :  { %3160 = vmatprep.subr.bf16.mxu0 %v3995_v63 }
 0x27e   :  { %3161 = vmatpush3.bf16.msra.mxu0 %v3995_v63 }
 0x27f   :  { %3162 = vmatprep.subr.bf16.mxu0 %v4003_v0 }
 0x282   :  { %3163 = vmatpush3.bf16.msra.mxu0 %v4003_v0 }
 0x283   :  { %3164 = vmatprep.subr.bf16.mxu0 %v4010_v1 }
 0x286   :  { %3165 = vmatpush3.bf16.msra.mxu0 %v4010_v1 }
 0x287   :  { %3166 = vmatprep.subr.bf16.mxu0 %v4017_v2 }
 0x28a   :  { %3167 = vmatpush3.bf16.msra.mxu0 %v4017_v2 }
 0x28b   :  { %3168 = vmatprep.subr.bf16.mxu0 %v4024_v3 }
 0x28e   :  { %3169 = vmatpush3.bf16.msra.mxu0 %v4024_v3 }
 0x28f   :  { %3194 = vmatprep.subr.bf16.mxu0 %v381_v48 }
 0x291   :  { %3171 = vmatmul.mubr.bf16.vlgmr.msra.gmra.mrb[12].mxu0 %v382_v47 }
 0x292   :  { %3195 = vmatpush3.bf16.msra.mxu0 %v381_v48  ;;  %3206 = vmatprep.mubr.msk.bf16.mxu0 %vm773_vm4, %v3580_v4  ;;  %v2769_v48 = vld [vmem:[%s4578_s6 + $0x50] sm:$0xff] }
 0x293   :  { %3196 = vmatprep.subr.bf16.mxu0 %v382_v47  ;;  %v2817_v4 = vld [vmem:[%s4580_s10 + $0x30] sm:$0xff] }
 0x296   :  { %3197 = vmatpush3.bf16.msra.mxu0 %v382_v47  ;;  %v2770_v47 = vld [vmem:[%s4578_s6 + $0x58] sm:$0xff] }
 0x33d   :  { %v3192_v5 = vpop.f32.mrb[8].mxu1 }
 0x33e   :  { %v716_v6 = vpop.f32.mrb[9].mxu1 }
 0x33f   :  { %v3193_v7 = vpop.f32.mrb[10].mxu1 }
 0x340   :  { %v734_v8 = vpack.c.bf16 %v3193_v7, %v3192_v5  ;;  %v719_v9 = vpop.f32.mrb[11].mxu1 }
 0x341   :  { %v733_v10 = vpack.c.bf16 %v719_v9, %v716_v6 }
 0x364   :  { %v3172_v11 = vpop.f32.mrb[12].mxu0 }
 0x365   :  { %v619_v12 = vpop.f32.mrb[13].mxu0 }
 0x366   :  { %v3173_v13 = vpop.f32.mrb[14].mxu0 }
 0x367   :  { %v732_v14 = vpack.c.bf16 %v3173_v13, %v3172_v11  ;;  %v622_v15 = vpop.f32.mrb[15].mxu0 }
 0x368   :  { %v731_v16 = vpack.c.bf16 %v622_v15, %v619_v12  ;;  %v3583_v15 = vld [vmem:[%s4579_s5 + $0x28] sm:$0xff]  }
 0x36a   :  { %3198 = vmatprep.subr.bf16.mxu0 %v731_v16 }
 0x36b   :  { %3199 = vmatpush3.bf16.msra.mxu0 %v731_v16  ;;  %v3584_v16 = vld [vmem:[%s4579_s5 + $0x30] sm:$0xff]  }
 0x36c   :  { %3200 = vmatprep.subr.bf16.mxu0 %v732_v14 }
 0x36f   :  { %3201 = vmatpush3.bf16.msra.mxu0 %v732_v14 }
 0x370   :  { %3202 = vmatprep.subr.bf16.mxu0 %v733_v10 }
 0x373   :  { %3203 = vmatpush3.bf16.msra.mxu0 %v733_v10 }
 0x374   :  { %3204 = vmatprep.subr.bf16.mxu0 %v734_v8 }
 0x377   :  { %3205 = vmatpush3.bf16.msra.mxu0 %v734_v8 }
 0x37a   :  { %3207 = vmatmul.mubr.msk.bf16.vlgmr.msra.gmra.mrb[16].mxu0 %vm773_vm4, %v3581_v19  ;;  %v3585_v19 = vld [vmem:[%s4579_s5 + $0x38] sm:$0xff]  }
 0x44d   :  { %v3208_v25 = vpop.f32.mrb[16].mxu0 }
 0x44e   :  { %v823_v26 = vadd.f32 %v3208_v25, %v756_v24  ;;  %v814_v27 = vpop.f32.mrb[17].mxu0 }
 0x44f   :  { %v815_v29 = vadd.f32 %v814_v27, %v746_v22  ;;  %v3209_v30 = vpop.f32.mrb[18].mxu0  ;;  %v3586_v22 = vld [vmem:[%s4582_s7 + $0x20] sm:$0xff]  }
 0x450   :  { %v831_v31 = vadd.f32 %v823_v26, %v3831_v17  ;;  %v826_v32 = vadd.f32 %v3209_v30, %v761_v28  ;;  %v817_v33 = vpop.f32.mrb[19].mxu0  ;;  %3230 = vmatprep.mubr.msk.bf16.mxu0 %vm459_vm3, %v3586_v22 }
 0x451   :  { %v829_v34 = vadd.f32 %v815_v29, %v3835_v20  ;;  %v818_v35 = vadd.f32 %v817_v33, %v751_v23  ;;  %v2771_v20 = vld [vmem:[%s4578_s6 + $0x60] sm:$0xff] }
 0x452   :  { %v832_v36 = vadd.f32 %v826_v32, %v3833_v18  ;;  %v4041_v38 = vmul.f32 0.999995, %v831_v31  ;;  %v2772_v18 = vld [vmem:[%s4578_s6 + $0x68] sm:$0xff] }
 0x453   :  { %v830_v37 = vadd.f32 %v818_v35, %v3837_v21  ;;  %v4045_v40 = vmul.f32 0.999995, %v829_v34  ;;  %v2774_v21 = vld [vmem:[%s4578_s6 + $0x78] sm:$0xff] }
 0x454   :  { %v4043_v39 = vmul.f32 0.999995, %v832_v36 }
 0x455   :  { %v4047_v41 = vmul.f32 0.999995, %v830_v37 }
 0x456   :  { %v3529_v17 = vpack.i.bf16 %v4043_v39, %v4041_v38  ;;  %v848_v14 = vpack.c.bf16 %v4043_v39, %v4041_v38 }
 0x457   :  { %v3524_v42 = vpack.i.bf16 %v4047_v41, %v4045_v40  ;;  %v847_v13 = vpack.c.bf16 %v4047_v41, %v4045_v40 }
 0x458   :  { %3530 = vrot.lane.b32.xlu1 %v3529_v17, %s3725_s22 }
 0x459   :  { %3525 = vrot.lane.b32.xlu0 %v3524_v42, %s3725_s22 }
 0x45c   :  { %894 = vperm.xlu1 %3513, %v2772_v18  }
 0x45d   :  { %889 = vperm.xlu0 %3512, %v2771_v20  }
 0x460   :  { %904 = vperm.xlu1 %3513, %v2774_v21  }
 0x461   :  { %899 = vperm.xlu0 %3512, %v2773_v44  }
 0x464   :  { %874 = vperm.xlu1 %3513, %v2768_v45  }
 0x465   :  { %869 = vperm.xlu0 %3512, %v2767_v46  }
 0x468   :  { %884 = vperm.xlu1 %3513, %v2770_v47  }
 0x469   :  { %879 = vperm.xlu0 %3512, %v2769_v48  }
 0x46c   :  { %1320 = vperm.xlu1 %3513, %v2816_v58  }
 0x46d   :  { %1315 = vperm.xlu0 %3512, %v2815_v59  }
 0x470   :  { %1330 = vperm.xlu1 %3513, %v2818_v62  }
 0x471   :  { %1325 = vperm.xlu0 %3512, %v2817_v4  }
 0x4ca   :  { %v3531_v5 = vpop.permute.xlu1 %3530 }
 0x4cb   :  { %v3526_v6 = vpop.permute.xlu0 %3525  ;;  %v3533_v7 = vunpack.i.h.bf16 %v3531_v5  ;;  %v3532_v8 = vunpack.i.l.bf16 %v3531_v5 }
 0x4cc   :  { %v3528_v9 = vunpack.i.h.bf16 %v3526_v6  ;;  %v3527_v10 = vunpack.i.l.bf16 %v3526_v6 }
 0x4cd   :  { %v846_v12 = vpack.c.bf16 %v3533_v7, %v3532_v8 }
 0x4ce   :  { %v845_v11 = vpack.c.bf16 %v3528_v9, %v3527_v10 }
 0x4d0   :  { %3210 = vmatprep.subr.bf16.mxu1 %v845_v11 }
 0x4d1   :  { %3211 = vmatpush3.bf16.msra.mxu1 %v845_v11 }
 0x4d2   :  { %3212 = vmatprep.subr.bf16.mxu1 %v846_v12 }
 0x4d5   :  { %3213 = vmatpush3.bf16.msra.mxu1 %v846_v12 }
 0x4d6   :  { %3214 = vmatprep.subr.bf16.mxu1 %v847_v13 }
 0x4d9   :  { %3215 = vmatpush3.bf16.msra.mxu1 %v847_v13 }
 0x4da   :  { %3216 = vmatprep.subr.bf16.mxu1 %v848_v14 }
 0x4db   :  { %v895_v25 = vpop.permute.xlu1 %894 }
 0x4dc   :  { %v890_v23 = vpop.permute.xlu0 %889 }
 0x4dd   :  { %3217 = vmatpush3.bf16.msra.mxu1 %v848_v14 }
 0x4de   :  { %3238 = vmatprep.subr.bf16.mxu1 %v3964_v49 }
 0x4df   :  { %v905_v30 = vpop.permute.xlu1 %904 }
 0x4e0   :  { %3219 = vmatmul.mubr.msk.bf16.vlgmr.msra.gmra.mrb[12].mxu1 %vm271_vm2, %v3583_v15  ;;  %v900_v29 = vpop.permute.xlu0 %899 }
 0x4e1   :  { %3222 = vmatprep.mubr.msk.bf16.mxu1 %vm271_vm2, %v3584_v16  ;;  %3239 = vmatpush3.bf16.msra.mxu1 %v3964_v49 }
 0x4e2   :  { %3240 = vmatprep.subr.bf16.mxu1 %v3976_v60 }
 0x4e3   :  { %v875_v21 = vpop.permute.xlu1 %874 }
 0x4e4   :  { %v870_v36 = vpop.permute.xlu0 %869 }
 0x4e5   :  { %3241 = vmatpush3.bf16.msra.mxu1 %v3976_v60 }
 0x4e6   :  { %3242 = vmatprep.subr.bf16.mxu1 %v3985_v61 }
 0x4e7   :  { %v885_v47 = vpop.permute.xlu1 %884 }
 0x4e8   :  { %3223 = vmatmul.mubr.msk.bf16.gmra.mrb[16].mxu1 %vm271_vm2, %v3585_v19  ;;  %v880_v45 = vpop.permute.xlu0 %879 }
 0x4e9   :  { %3243 = vmatpush3.bf16.msra.mxu1 %v3985_v61 }
 0x4ea   :  { %3244 = vmatprep.subr.bf16.mxu1 %v3995_v63 }
 0x4ed   :  { %3245 = vmatpush3.bf16.msra.mxu1 %v3995_v63 }
 0x4ee   :  { %3246 = vmatprep.subr.bf16.mxu1 %v4003_v0 }
 0x4f1   :  { %3247 = vmatpush3.bf16.msra.mxu1 %v4003_v0 }
 0x4f2   :  { %3248 = vmatprep.subr.bf16.mxu1 %v4010_v1 }
 0x4f5   :  { %3249 = vmatpush3.bf16.msra.mxu1 %v4010_v1 }
 0x4f6   :  { %3250 = vmatprep.subr.bf16.mxu1 %v4017_v2 }
 0x4f9   :  { %3251 = vmatpush3.bf16.msra.mxu1 %v4017_v2 }
 0x4fa   :  { %3252 = vmatprep.subr.bf16.mxu1 %v4024_v3 }
 0x4fd   :  { %3253 = vmatpush3.bf16.msra.mxu1 %v4024_v3 }
 0x5b3   :  { %v3220_v24 = vpop.f32.mrb[12].mxu1 }
 0x5b4   :  { %v973_v26 = vpop.f32.mrb[13].mxu1  ;;  %v982_v46 = vadd.f32 %v3220_v24, %v880_v45 }
 0x5b5   :  { %v3221_v27 = vpop.f32.mrb[14].mxu1  ;;  %v974_v48 = vadd.f32 %v973_v26, %v870_v36 }
 0x5b6   :  { %v976_v28 = vpop.f32.mrb[15].mxu1  ;;  %v985_v58 = vadd.f32 %v3221_v27, %v885_v47 }
 0x5b7   :  { %v977_v59 = vadd.f32 %v976_v28, %v875_v21 }
 0x5bb   :  { %v3224_v31 = vpop.f32.mrb[16].mxu1 }
 0x5bc   :  { %v998_v32 = vadd.f32 %v3224_v31, %v900_v29  ;;  %v989_v33 = vpop.f32.mrb[17].mxu1  ;;  %v3587_v29 = vld [vmem:[%s4582_s7 + $0x28] sm:$0xff]   ;;  %v3589_v31 = vld [vmem:[%s4582_s7 + $0x38] sm:$0xff]  }
 0x5bd   :  { %v990_v34 = vadd.f32 %v989_v33, %v890_v23  ;;  %v3225_v35 = vpop.f32.mrb[18].mxu1 }
 0x5be   :  { %v2785_v37 = vmul.f32 -1.442695, %v998_v32  ;;  %v1001_v17 = vadd.f32 %v3225_v35, %v905_v30  ;;  %v992_v42 = vpop.f32.mrb[19].mxu1  ;;  %v3588_v30 = vld [vmem:[%s4582_s7 + $0x30] sm:$0xff]  }
 0x5bf   :  { %v2783_v18 = vmul.f32 -1.442695, %v990_v34  ;;  %v993_v20 = vadd.f32 %v992_v42, %v895_v25 }
 0x5c0   :  { %3643 = vpow2.f32 %v2785_v37  ;;  %v2786_v43 = vmul.f32 -1.442695, %v1001_v17  ;;  %v3591_v37 = vld [vmem:[%s4584_s9 + $0x18] sm:$0xff]  }
 0x5c1   :  { %3645 = vpow2.f32 %v2783_v18  ;;  %v2784_v44 = vmul.f32 -1.442695, %v993_v20 }
 0x5c2   :  { %3647 = vpow2.f32 %v2786_v43 }
 0x5c3   :  { %3649 = vpow2.f32 %v2784_v44 }
 0x5c4   :  { %3651 = vtanh.f32 %v982_v46 }
 0x5c5   :  { %3653 = vtanh.f32 %v974_v48 }
 0x5c6   :  { %3655 = vtanh.f32 %v985_v58 }
 0x5c7   :  { %3657 = vtanh.f32 %v977_v59 }
 0x5ca   :  { %v3644_v62 = vpop.eup %3643 }
 0x5cb   :  { %v3646_v4 = vpop.eup %3645  ;;  %v1022_v5 = vadd.f32 1.0, %v3644_v62  ;;  %v3592_v62 = vld [vmem:[%s4579_s5 + $0x40] sm:$0xff]  }
 0x5cc   :  { %v3648_v6 = vpop.eup %3647  ;;  %v1020_v7 = vadd.f32 1.0, %v3646_v4  ;;  %v2837_v4 = vld [vmem:[%s4578_s6 + $0xb0] sm:$0xff] }
 0x5cd   :  { %v3650_v8 = vpop.eup %3649  ;;  %3659 = vrcp.f32 %v1022_v5  ;;  %v1023_v9 = vadd.f32 1.0, %v3648_v6  ;;  %v2832_v5 = vld [vmem:[%s4578_s6 + $0x88] sm:$0xff]  ;;  %v2831_v6 = vld [vmem:[%s4578_s6 + $0x80] sm:$0xff] }
 0x5ce   :  { %3661 = vrcp.f32 %v1020_v7  ;;  %v1021_v10 = vadd.f32 1.0, %v3650_v8  ;;  %v3652_v11 = vpop.eup %3651  ;;  %v2834_v7 = vld [vmem:[%s4578_s6 + $0x98] sm:$0xff]  ;;  %v2833_v8 = vld [vmem:[%s4578_s6 + $0x90] sm:$0xff] }
 0x5cf   :  { %3663 = vrcp.f32 %v1023_v9  ;;  %v3654_v12 = vpop.eup %3653  ;;  %v2880_v9 = vld [vmem:[%s4580_s10 + $0x48] sm:$0xff] }
 0x5d0   :  { %3665 = vrcp.f32 %v1021_v10  ;;  %v3656_v13 = vpop.eup %3655  ;;  %v2879_v10 = vld [vmem:[%s4580_s10 + $0x40] sm:$0xff] }
 0x5d1   :  { %v3658_v14 = vpop.eup %3657 }
 0x5d7   :  { %v3660_v15 = vpop.eup %3659 }
 0x5d8   :  { %v3662_v16 = vpop.eup %3661  ;;  %v1034_v19 = vmul.f32 %v3660_v15, %v3652_v11  ;;  %v2882_v11 = vld [vmem:[%s4580_s10 + $0x58] sm:$0xff] }
 0x5d9   :  { %v3664_v22 = vpop.eup %3663  ;;  %v1032_v23 = vmul.f32 %v3662_v16, %v3654_v12  ;;  %v2881_v12 = vld [vmem:[%s4580_s10 + $0x50] sm:$0xff] }
 0x5da   :  { %v3666_v24 = vpop.eup %3665  ;;  %v1035_v25 = vmul.f32 %v3664_v22, %v3656_v13 }
 0x5db   :  { %v1033_v26 = vmul.f32 %v3666_v24, %v3658_v14 }
 0x5dc   :  { %v1037_v27 = vpack.c.bf16 %v1035_v25, %v1034_v19 }
 0x5dd   :  { %v1036_v28 = vpack.c.bf16 %v1033_v26, %v1032_v23 }
 0x5df   :  { %3226 = vmatprep.subr.bf16.mxu0 %v1036_v28  ;;  %3254 = vmatprep.mubr.bf16.mxu1 %v1036_v28 }
 0x5e0   :  { %3278 = vmatprep.subr.bf16.mxu1 %v1036_v28  ;;  %3227 = vmatpush3.bf16.msra.mxu0 %v1036_v28 }
 0x5e1   :  { %3255 = vmatmul.mubr.bf16.vlgmr.msra.gmra.mrb[20].mxu1 %v1037_v27  ;;  %3228 = vmatprep.subr.bf16.mxu0 %v1037_v27 }
 0x5e2   :  { %3279 = vmatpush3.bf16.msra.mxu1 %v1036_v28 }
 0x5e3   :  { %3280 = vmatprep.subr.bf16.mxu1 %v1037_v27 }
 0x5e4   :  { %3229 = vmatpush3.bf16.msra.mxu0 %v1037_v27 }
 0x5e5   :  { %3258 = vmatprep.subr.bf16.mxu0 %v3904_v50 }
 0x5e6   :  { %3281 = vmatpush3.bf16.msra.mxu1 %v1037_v27 }
 0x5e7   :  { %3231 = vmatmul.mubr.msk.bf16.vlgmr.msra.gmra.mrb[4].mxu0 %vm459_vm3, %v3587_v29  ;;  %v3595_v29 = vld [vmem:[%s4579_s5 + $0x58] sm:$0xff]  }
 0x5e8   :  { %3259 = vmatpush3.bf16.msra.mxu0 %v3904_v50  ;;  %3234 = vmatprep.mubr.msk.bf16.mxu0 %vm459_vm3, %v3588_v30  ;;  %v3590_v50 = vld [vmem:[%s4584_s9 + $0x10] sm:$0xff]   ;;  %v3596_v30 = vld [vmem:[%s4582_s7 + $0x40] sm:$0xff]  }
 0x5e9   :  { %3260 = vmatprep.subr.bf16.mxu0 %v3911_v51  ;;  %3290 = vmatprep.mubr.msk.bf16.mxu1 %vm773_vm4, %v3590_v50 }
 0x5ec   :  { %3261 = vmatpush3.bf16.msra.mxu0 %v3911_v51 }
 0x5ed   :  { %3262 = vmatprep.subr.bf16.mxu0 %v3918_v52 }
 0x5ef   :  { %3235 = vmatmul.mubr.msk.bf16.gmra.mrb[8].mxu0 %vm459_vm3, %v3589_v31 }
 0x5f0   :  { %3263 = vmatpush3.bf16.msra.mxu0 %v3918_v52  ;;  %3274 = vmatprep.mubr.bf16.mxu0 %v1036_v28  ;;  %v3594_v28 = vld [vmem:[%s4579_s5 + $0x50] sm:$0xff]  }
 0x5f1   :  { %3264 = vmatprep.subr.bf16.mxu0 %v3925_v53 }
 0x5f4   :  { %3265 = vmatpush3.bf16.msra.mxu0 %v3925_v53 }
 0x5f5   :  { %3266 = vmatprep.subr.bf16.mxu0 %v3932_v54 }
 0x5f8   :  { %3267 = vmatpush3.bf16.msra.mxu0 %v3932_v54 }
 0x5f9   :  { %3268 = vmatprep.subr.bf16.mxu0 %v3939_v55 }
 0x5fc   :  { %3269 = vmatpush3.bf16.msra.mxu0 %v3939_v55 }
 0x5fd   :  { %3270 = vmatprep.subr.bf16.mxu0 %v3946_v56 }
 0x600   :  { %3271 = vmatpush3.bf16.msra.mxu0 %v3946_v56 }
 0x601   :  { %3272 = vmatprep.subr.bf16.mxu0 %v3953_v57 }
 0x604   :  { %3273 = vmatpush3.bf16.msra.mxu0 %v3953_v57 }
 0x607   :  { %3275 = vmatmul.mubr.bf16.vlgmr.msra.gmra.mrb[20].mxu0 %v1037_v27  ;;  %v3593_v27 = vld [vmem:[%s4579_s5 + $0x48] sm:$0xff]  }
 0x608   :  { %3302 = vmatprep.mubr.msk.bf16.mxu0 %vm271_vm2, %v3592_v62 }
 0x6b4   :  { %v3256_v51 = vpop.f32.mrb[20].mxu1 }
 0x6b5   :  { %v1235_v52 = vpop.f32.mrb[21].mxu1 }
 0x6b6   :  { %v3257_v53 = vpop.f32.mrb[22].mxu1 }
 0x6b7   :  { %v1300_v54 = vpack.c.bf16 %v3257_v53, %v3256_v51  ;;  %v1238_v55 = vpop.f32.mrb[23].mxu1 }
 0x6b8   :  { %v1299_v32 = vpack.c.bf16 %v1238_v55, %v1235_v52 }
 0x6ba   :  { %3282 = vmatprep.subr.bf16.mxu1 %v1299_v32 }
 0x6bb   :  { %3283 = vmatpush3.bf16.msra.mxu1 %v1299_v32 }
 0x6bc   :  { %3284 = vmatprep.subr.bf16.mxu1 %v1300_v54 }
 0x6bf   :  { %3285 = vmatpush3.bf16.msra.mxu1 %v1300_v54 }
 0x6da   :  { %v3276_v56 = vpop.f32.mrb[20].mxu0 }
 0x6db   :  { %v1284_v33 = vpop.f32.mrb[21].mxu0 }
 0x6dc   :  { %v3277_v57 = vpop.f32.mrb[22].mxu0 }
 0x6dd   :  { %v1302_v34 = vpack.c.bf16 %v3277_v57, %v3276_v56  ;;  %v1287_v35 = vpop.f32.mrb[23].mxu0 }
 0x6de   :  { %v1301_v36 = vpack.c.bf16 %v1287_v35, %v1284_v33 }
 0x6e0   :  { %3286 = vmatprep.subr.bf16.mxu1 %v1301_v36 }
 0x6e1   :  { %3287 = vmatpush3.bf16.msra.mxu1 %v1301_v36 }
 0x6e2   :  { %3288 = vmatprep.subr.bf16.mxu1 %v1302_v34 }
 0x6e5   :  { %3289 = vmatpush3.bf16.msra.mxu1 %v1302_v34 }
 0x6e6   :  { %3322 = vmatprep.subr.bf16.mxu1 %v3964_v49 }
 0x6e8   :  { %3291 = vmatmul.mubr.msk.bf16.vlgmr.msra.gmra.mrb[24].mxu1 %vm773_vm4, %v3591_v37 }
 0x6e9   :  { %3323 = vmatpush3.bf16.msra.mxu1 %v3964_v49  ;;  %v1316_v49 = vpop.permute.xlu0 %1315 }
 0x6ea   :  { %3324 = vmatprep.subr.bf16.mxu1 %v3976_v60 }
 0x6ed   :  { %3325 = vmatpush3.bf16.msra.mxu1 %v3976_v60  ;;  %v1321_v60 = vpop.permute.xlu1 %1320 }
 0x6ee   :  { %3326 = vmatprep.subr.bf16.mxu1 %v3985_v61 }
 0x6f1   :  { %3327 = vmatpush3.bf16.msra.mxu1 %v3985_v61  ;;  %v1326_v61 = vpop.permute.xlu0 %1325  ;;  %v1331_v18 = vpop.permute.xlu1 %1330 }
 0x6f2   :  { %3328 = vmatprep.subr.bf16.mxu1 %v3995_v63 }
 0x6f5   :  { %3329 = vmatpush3.bf16.msra.mxu1 %v3995_v63 }
 0x6f6   :  { %3330 = vmatprep.subr.bf16.mxu1 %v4003_v0 }
 0x6f9   :  { %3331 = vmatpush3.bf16.msra.mxu1 %v4003_v0 }
 0x6fa   :  { %3332 = vmatprep.subr.bf16.mxu1 %v4010_v1 }
 0x6fd   :  { %3333 = vmatpush3.bf16.msra.mxu1 %v4010_v1 }
 0x6fe   :  { %3334 = vmatprep.subr.bf16.mxu1 %v4017_v2 }
 0x701   :  { %3335 = vmatpush3.bf16.msra.mxu1 %v4017_v2 }
 0x702   :  { %3336 = vmatprep.subr.bf16.mxu1 %v4024_v3 }
 0x705   :  { %3337 = vmatpush3.bf16.msra.mxu1 %v4024_v3 }
 0x7bb   :  { %v3292_v63 = vpop.f32.mrb[24].mxu1 }
 0x7bc   :  { %v1392_v17 = vadd.f32 %v3292_v63, %v1326_v61  ;;  %v1383_v42 = vpop.f32.mrb[25].mxu1 }
 0x7bd   :  { %v1384_v0 = vadd.f32 %v1383_v42, %v1316_v49  ;;  %v3293_v20 = vpop.f32.mrb[26].mxu1 }
 0x7be   :  { %v1400_v21 = vadd.f32 %v1392_v17, %v4041_v38  ;;  %v1395_v1 = vadd.f32 %v3293_v20, %v1331_v18  ;;  %v1386_v43 = vpop.f32.mrb[27].mxu1 }
 0x7bf   :  { %v1398_v44 = vadd.f32 %v1384_v0, %v4045_v40  ;;  %v1387_v2 = vadd.f32 %v1386_v43, %v1321_v60  ;;  %v2835_v40 = vld [vmem:[%s4578_s6 + $0xa0] sm:$0xff] }
 0x7c0   :  { %v1401_v45 = vadd.f32 %v1395_v1, %v4043_v39  ;;  %v4187_v46 = vmul.f32 0.999995, %v1400_v21  ;;  %v2836_v39 = vld [vmem:[%s4578_s6 + $0xa8] sm:$0xff] }
 0x7c1   :  { %v1399_v3 = vadd.f32 %v1387_v2, %v4047_v41  ;;  %v4191_v48 = vmul.f32 0.999995, %v1398_v44  ;;  %v2838_v41 = vld [vmem:[%s4578_s6 + $0xb8] sm:$0xff] }
 0x7c2   :  { %v4189_v47 = vmul.f32 0.999995, %v1401_v45 }
 0x7c3   :  { %v4193_v58 = vmul.f32 0.999995, %v1399_v3 }
 0x7c4   :  { %v3539_v38 = vpack.i.bf16 %v4189_v47, %v4187_v46  ;;  %v1417_v26 = vpack.c.bf16 %v4189_v47, %v4187_v46 }
 0x7c5   :  { %v3534_v59 = vpack.i.bf16 %v4193_v58, %v4191_v48  ;;  %v1416_v25 = vpack.c.bf16 %v4193_v58, %v4191_v48 }
 0x7c6   :  { %3540 = vrot.lane.b32.xlu1 %v3539_v38, %s3724_s3 }
 0x7c7   :  { %3535 = vrot.lane.b32.xlu0 %v3534_v59, %s3724_s3 }
 0x7ca   :  { %1463 = vperm.xlu1 %3513, %v2836_v39  }
 0x7cb   :  { %1458 = vperm.xlu0 %3512, %v2835_v40  }
 0x7ce   :  { %1473 = vperm.xlu1 %3513, %v2838_v41  }
 0x7cf   :  { %1468 = vperm.xlu0 %3512, %v2837_v4  }
 0x7d2   :  { %1443 = vperm.xlu1 %3513, %v2832_v5  }
 0x7d3   :  { %1438 = vperm.xlu0 %3512, %v2831_v6  }
 0x7d6   :  { %1453 = vperm.xlu1 %3513, %v2834_v7  }
 0x7d7   :  { %1448 = vperm.xlu0 %3512, %v2833_v8  }
 0x7da   :  { %1889 = vperm.xlu1 %3513, %v2880_v9  }
 0x7db   :  { %1884 = vperm.xlu0 %3512, %v2879_v10  }
 0x7de   :  { %1899 = vperm.xlu1 %3513, %v2882_v11  }
 0x7df   :  { %1894 = vperm.xlu0 %3512, %v2881_v12  }
 0x838   :  { %v3541_v13 = vpop.permute.xlu1 %3540 }
 0x839   :  { %v3536_v14 = vpop.permute.xlu0 %3535  ;;  %v3543_v15 = vunpack.i.h.bf16 %v3541_v13  ;;  %v3542_v16 = vunpack.i.l.bf16 %v3541_v13 }
 0x83a   :  { %v3538_v19 = vunpack.i.h.bf16 %v3536_v14  ;;  %v3537_v22 = vunpack.i.l.bf16 %v3536_v14 }
 0x83b   :  { %v1415_v24 = vpack.c.bf16 %v3543_v15, %v3542_v16 }
 0x83c   :  { %v1414_v23 = vpack.c.bf16 %v3538_v19, %v3537_v22  ;;  %v3597_v19 = vld [vmem:[%s4582_s7 + $0x48] sm:$0xff]   ;;  %v3598_v22 = vld [vmem:[%s4582_s7 + $0x50] sm:$0xff]  }
 0x83e   :  { %3294 = vmatprep.subr.bf16.mxu0 %v1414_v23 }
 0x83f   :  { %3295 = vmatpush3.bf16.msra.mxu0 %v1414_v23  ;;  %v3715_v23 = vld [vmem:[%s4581_s2] sm:$0xff]  }
 0x840   :  { %3296 = vmatprep.subr.bf16.mxu0 %v1415_v24 }
 0x843   :  { %3297 = vmatpush3.bf16.msra.mxu0 %v1415_v24  ;;  %v3716_v24 = vld [vmem:[%s4581_s2 + $0x8] sm:$0xff]  }
 0x844   :  { %3298 = vmatprep.subr.bf16.mxu0 %v1416_v25 }
 0x847   :  { %3299 = vmatpush3.bf16.msra.mxu0 %v1416_v25  ;;  %v3599_v25 = vld [vmem:[%s4582_s7 + $0x58] sm:$0xff]  }
 0x848   :  { %3300 = vmatprep.subr.bf16.mxu0 %v1417_v26 }
 0x849   :  { %v1464_v51 = vpop.permute.xlu1 %1463 }
 0x84a   :  { %v1459_v31 = vpop.permute.xlu0 %1458 }
 0x84b   :  { %3301 = vmatpush3.bf16.msra.mxu0 %v1417_v26  ;;  %v3717_v26 = vld [vmem:[%s4581_s2 + $0x10] sm:$0xff]  }
 0x84d   :  { %v1474_v32 = vpop.permute.xlu1 %1473 }
 0x84e   :  { %3303 = vmatmul.mubr.msk.bf16.vlgmr.msra.gmra.mrb[24].mxu0 %vm271_vm2, %v3593_v27  ;;  %v1469_v55 = vpop.permute.xlu0 %1468  ;;  %v3718_v27 = vld [vmem:[%s4581_s2 + $0x18] sm:$0xff]  }
 0x84f   :  { %3306 = vmatprep.mubr.msk.bf16.mxu0 %vm271_vm2, %v3594_v28  ;;  %v3719_v28 = vld [vmem:[%s4581_s2 + $0x20] sm:$0xff]  }
 0x851   :  { %v1444_v17 = vpop.permute.xlu1 %1443 }
 0x852   :  { %v1439_v36 = vpop.permute.xlu0 %1438 }
 0x855   :  { %v1454_v21 = vpop.permute.xlu1 %1453 }
 0x856   :  { %3307 = vmatmul.mubr.msk.bf16.gmra.mrb[28].mxu0 %vm271_vm2, %v3595_v29  ;;  %v1449_v0 = vpop.permute.xlu0 %1448  ;;  %v3720_v29 = vld [vmem:[%s4581_s2 + $0x28] sm:$0xff]  }
 0x857   :  { %3314 = vmatprep.mubr.msk.bf16.mxu0 %vm459_vm3, %v3596_v30  ;;  %v3721_v30 = vld [vmem:[%s4581_s2 + $0x30] sm:$0xff]  }
 0x921   :  { %v3304_v50 = vpop.f32.mrb[24].mxu0 }
 0x922   :  { %v1542_v52 = vpop.f32.mrb[25].mxu0  ;;  %v1551_v20 = vadd.f32 %v3304_v50, %v1449_v0  ;;  %v3600_v50 = vld [vmem:[%s4584_s9 + $0x20] sm:$0xff]  }
 0x923   :  { %v3305_v53 = vpop.f32.mrb[26].mxu0  ;;  %v1543_v1 = vadd.f32 %v1542_v52, %v1439_v36 }
 0x924   :  { %v1545_v54 = vpop.f32.mrb[27].mxu0  ;;  %v1554_v43 = vadd.f32 %v3305_v53, %v1454_v21 }
 0x925   :  { %v1546_v44 = vadd.f32 %v1545_v54, %v1444_v17 }
 0x929   :  { %v3308_v56 = vpop.f32.mrb[28].mxu0 }
 0x92a   :  { %v1567_v33 = vadd.f32 %v3308_v56, %v1469_v55  ;;  %v1558_v57 = vpop.f32.mrb[29].mxu0 }
 0x92b   :  { %v1559_v34 = vadd.f32 %v1558_v57, %v1459_v31  ;;  %v3309_v35 = vpop.f32.mrb[30].mxu0  ;;  %v3722_v31 = vld [vmem:[%s4581_s2 + $0x38] sm:$0xff]  }
 0x92c   :  { %v2849_v37 = vmul.f32 -1.442695, %v1567_v33  ;;  %v1570_v49 = vadd.f32 %v3309_v35, %v1474_v32  ;;  %v1561_v60 = vpop.f32.mrb[31].mxu0 }
 0x92d   :  { %v2847_v61 = vmul.f32 -1.442695, %v1559_v34  ;;  %v1562_v63 = vadd.f32 %v1561_v60, %v1464_v51  ;;  %v1890_v60 = vpop.permute.xlu1 %1889 }
 0x92e   :  { %3667 = vpow2.f32 %v2849_v37  ;;  %v2850_v42 = vmul.f32 -1.442695, %v1570_v49  ;;  %v3601_v37 = vld [vmem:[%s4584_s9 + $0x28] sm:$0xff]   ;;  %v1885_v49 = vpop.permute.xlu0 %1884 }
 0x92f   :  { %3669 = vpow2.f32 %v2847_v61  ;;  %v2848_v18 = vmul.f32 -1.442695, %v1562_v63 }
 0x930   :  { %3671 = vpow2.f32 %v2850_v42 }
 0x931   :  { %3673 = vpow2.f32 %v2848_v18  ;;  %v1900_v18 = vpop.permute.xlu1 %1899 }
 0x932   :  { %3675 = vtanh.f32 %v1551_v20  ;;  %v1895_v61 = vpop.permute.xlu0 %1894 }
 0x933   :  { %3677 = vtanh.f32 %v1543_v1 }
 0x934   :  { %3679 = vtanh.f32 %v1554_v43 }
 0x935   :  { %3681 = vtanh.f32 %v1546_v44 }
 0x938   :  { %v3668_v2 = vpop.eup %3667 }
 0x939   :  { %v3670_v45 = vpop.eup %3669  ;;  %v1591_v3 = vadd.f32 1.0, %v3668_v2 }
 0x93a   :  { %v3672_v38 = vpop.eup %3671  ;;  %v1589_v59 = vadd.f32 1.0, %v3670_v45 }
 0x93b   :  { %v3674_v39 = vpop.eup %3673  ;;  %3683 = vrcp.f32 %v1591_v3  ;;  %v1592_v40 = vadd.f32 1.0, %v3672_v38 }
 0x93c   :  { %3685 = vrcp.f32 %v1589_v59  ;;  %v1590_v41 = vadd.f32 1.0, %v3674_v39  ;;  %v3676_v62 = vpop.eup %3675 }
 0x93d   :  { %3687 = vrcp.f32 %v1592_v40  ;;  %v3678_v4 = vpop.eup %3677 }
 0x93e   :  { %3689 = vrcp.f32 %v1590_v41  ;;  %v3680_v5 = vpop.eup %3679 }
 0x93f   :  { %v3682_v6 = vpop.eup %3681 }
 0x945   :  { %v3684_v7 = vpop.eup %3683 }
 0x946   :  { %v3686_v8 = vpop.eup %3685  ;;  %v1603_v9 = vmul.f32 %v3684_v7, %v3676_v62  ;;  %v2896_v7 = vld [vmem:[%s4578_s6 + $0xc8] sm:$0xff] }
 0x947   :  { %v3688_v10 = vpop.eup %3687  ;;  %v1601_v11 = vmul.f32 %v3686_v8, %v3678_v4  ;;  %v2895_v8 = vld [vmem:[%s4578_s6 + $0xc0] sm:$0xff] }
 0x948   :  { %v3690_v12 = vpop.eup %3689  ;;  %v1604_v13 = vmul.f32 %v3688_v10, %v3680_v5  ;;  %v2897_v10 = vld [vmem:[%s4578_s6 + $0xd0] sm:$0xff] }
 0x949   :  { %v1602_v14 = vmul.f32 %v3690_v12, %v3682_v6  ;;  %v2901_v6 = vld [vmem:[%s4578_s6 + $0xf0] sm:$0xff]  ;;  %v391_v12 = vld [vmem:[%s4585_s8] sm:$0xff] }
 0x94a   :  { %v1606_v15 = vpack.c.bf16 %v1604_v13, %v1603_v9  ;;  %v2898_v9 = vld [vmem:[%s4578_s6 + $0xd8] sm:$0xff]  ;;  %v2796_v13 = vld [vmem:[%s4585_s8 + $0x48] sm:$0xff] }
 0x94b   :  { %v1605_v16 = vpack.c.bf16 %v1602_v14, %v1601_v11  ;;  %v392_v11 = vld [vmem:[%s4585_s8 + $0x8] sm:$0xff]  ;;  %v2795_v14 = vld [vmem:[%s4585_s8 + $0x40] sm:$0xff] }
 0x94d   :  { %3310 = vmatprep.subr.bf16.mxu0 %v1605_v16  ;;  %3338 = vmatprep.mubr.bf16.mxu1 %v1605_v16 }
 0x94e   :  { %3362 = vmatprep.subr.bf16.mxu1 %v1605_v16  ;;  %3311 = vmatpush3.bf16.msra.mxu0 %v1605_v16 }
 0x94f   :  { %3339 = vmatmul.mubr.bf16.vlgmr.msra.gmra.mrb[28].mxu1 %v1606_v15  ;;  %3312 = vmatprep.subr.bf16.mxu0 %v1606_v15 }
 0x950   :  { %3363 = vmatpush3.bf16.msra.mxu1 %v1605_v16  ;;  %3374 = vmatprep.mubr.msk.bf16.mxu1 %vm773_vm4, %v3600_v50  ;;  %v2799_v50 = vld [vmem:[%s4585_s8 + $0x60] sm:$0xff] }
 0x951   :  { %3364 = vmatprep.subr.bf16.mxu1 %v1606_v15 }
 0x952   :  { %3313 = vmatpush3.bf16.msra.mxu0 %v1606_v15 }
 0x953   :  { %3342 = vmatprep.subr.bf16.mxu0 %v3715_v23 }
 0x954   :  { %3365 = vmatpush3.bf16.msra.mxu1 %v1606_v15 }
 0x955   :  { %3315 = vmatmul.mubr.msk.bf16.vlgmr.msra.gmra.mrb[4].mxu0 %vm459_vm3, %v3597_v19  ;;  %v394_v19 = vld [vmem:[%s4585_s8 + $0x18] sm:$0xff] }
 0x956   :  { %3343 = vmatpush3.bf16.msra.mxu0 %v3715_v23  ;;  %3318 = vmatprep.mubr.msk.bf16.mxu0 %vm459_vm3, %v3598_v22  ;;  %v393_v22 = vld [vmem:[%s4585_s8 + $0x10] sm:$0xff]  ;;  %v2798_v23 = vld [vmem:[%s4585_s8 + $0x58] sm:$0xff] }
 0x957   :  { %3344 = vmatprep.subr.bf16.mxu0 %v3716_v24 }
 0x95a   :  { %3345 = vmatpush3.bf16.msra.mxu0 %v3716_v24  ;;  %v2797_v24 = vld [vmem:[%s4585_s8 + $0x50] sm:$0xff] }
 0x95b   :  { %3346 = vmatprep.subr.bf16.mxu0 %v3717_v26 }
 0x95d   :  { %3319 = vmatmul.mubr.msk.bf16.gmra.mrb[8].mxu0 %vm459_vm3, %v3599_v25  ;;  %v2924_v25 = vld [vmem:[%s4585_s8 + $0xc8] sm:$0xff] }
 0x95e   :  { %3347 = vmatpush3.bf16.msra.mxu0 %v3717_v26  ;;  %3358 = vmatprep.mubr.bf16.mxu0 %v1605_v16  ;;  %v2859_v16 = vld [vmem:[%s4585_s8 + $0x80] sm:$0xff] }
 0x95f   :  { %3348 = vmatprep.subr.bf16.mxu0 %v3718_v27  ;;  %v2923_v26 = vld [vmem:[%s4585_s8 + $0xc0] sm:$0xff] }
 0x962   :  { %3349 = vmatpush3.bf16.msra.mxu0 %v3718_v27  ;;  %v2862_v27 = vld [vmem:[%s4585_s8 + $0x98] sm:$0xff] }
 0x963   :  { %3350 = vmatprep.subr.bf16.mxu0 %v3719_v28 }
 0x966   :  { %3351 = vmatpush3.bf16.msra.mxu0 %v3719_v28  ;;  %v2861_v28 = vld [vmem:[%s4585_s8 + $0x90] sm:$0xff] }
 0x967   :  { %3352 = vmatprep.subr.bf16.mxu0 %v3720_v29 }
 0x96a   :  { %3353 = vmatpush3.bf16.msra.mxu0 %v3720_v29  ;;  %v396_v29 = vld [vmem:[%s4585_s8 + $0x28] sm:$0xff] }
 0x96b   :  { %3354 = vmatprep.subr.bf16.mxu0 %v3721_v30 }
 0x96e   :  { %3355 = vmatpush3.bf16.msra.mxu0 %v3721_v30  ;;  %v395_v30 = vld [vmem:[%s4585_s8 + $0x20] sm:$0xff] }
 0x96f   :  { %3356 = vmatprep.subr.bf16.mxu0 %v3722_v31 }
 0x972   :  { %3357 = vmatpush3.bf16.msra.mxu0 %v3722_v31  ;;  %v2800_v31 = vld [vmem:[%s4585_s8 + $0x68] sm:$0xff] }
 0x975   :  { %3359 = vmatmul.mubr.bf16.vlgmr.msra.gmra.mrb[32].mxu0 %v1606_v15  ;;  %v2860_v15 = vld [vmem:[%s4585_s8 + $0x88] sm:$0xff] }
 0xa22   :  { %v3340_v51 = vpop.f32.mrb[28].mxu1 }
 0xa23   :  { %v1804_v52 = vpop.f32.mrb[29].mxu1 }
 0xa24   :  { %v3341_v53 = vpop.f32.mrb[30].mxu1 }
 0xa25   :  { %v1869_v54 = vpack.c.bf16 %v3341_v53, %v3340_v51  ;;  %v1807_v55 = vpop.f32.mrb[31].mxu1  ;;  %v2926_v51 = vld [vmem:[%s4585_s8 + $0xd8] sm:$0xff]  ;;  %v2864_v53 = vld [vmem:[%s4585_s8 + $0xa8] sm:$0xff] }
 0xa26   :  { %v1868_v32 = vpack.c.bf16 %v1807_v55, %v1804_v52  ;;  %v2925_v52 = vld [vmem:[%s4585_s8 + $0xd0] sm:$0xff]  ;;  %v398_v55 = vld [vmem:[%s4585_s8 + $0x38] sm:$0xff] }
 0xa28   :  { %3366 = vmatprep.subr.bf16.mxu1 %v1868_v32 }
 0xa29   :  { %3367 = vmatpush3.bf16.msra.mxu1 %v1868_v32  ;;  %v397_v32 = vld [vmem:[%s4585_s8 + $0x30] sm:$0xff] }
 0xa2a   :  { %3368 = vmatprep.subr.bf16.mxu1 %v1869_v54 }
 0xa2d   :  { %3369 = vmatpush3.bf16.msra.mxu1 %v1869_v54  ;;  %v2863_v54 = vld [vmem:[%s4585_s8 + $0xa0] sm:$0xff] }
 0xa48   :  { %v3360_v56 = vpop.f32.mrb[32].mxu0 }
 0xa49   :  { %v1853_v33 = vpop.f32.mrb[33].mxu0 }
 0xa4a   :  { %v3361_v57 = vpop.f32.mrb[34].mxu0 }
 0xa4b   :  { %v1871_v34 = vpack.c.bf16 %v3361_v57, %v3360_v56  ;;  %v1856_v35 = vpop.f32.mrb[35].mxu0  ;;  %v2802_v56 = vld [vmem:[%s4585_s8 + $0x78] sm:$0xff]  ;;  %v2928_v57 = vld [vmem:[%s4585_s8 + $0xe8] sm:$0xff] }
 0xa4c   :  { %v1870_v36 = vpack.c.bf16 %v1856_v35, %v1853_v33  ;;  %v2801_v33 = vld [vmem:[%s4585_s8 + $0x70] sm:$0xff]  ;;  %v2866_v35 = vld [vmem:[%s4585_s8 + $0xb8] sm:$0xff] }
 0xa4e   :  { %3370 = vmatprep.subr.bf16.mxu1 %v1870_v36 }
 0xa4f   :  { %3371 = vmatpush3.bf16.msra.mxu1 %v1870_v36  ;;  %v2865_v36 = vld [vmem:[%s4585_s8 + $0xb0] sm:$0xff] }
 0xa50   :  { %3372 = vmatprep.subr.bf16.mxu1 %v1871_v34 }
 0xa53   :  { %3373 = vmatpush3.bf16.msra.mxu1 %v1871_v34  ;;  %v2927_v34 = vld [vmem:[%s4585_s8 + $0xe0] sm:$0xff] }
 0xa56   :  { %3375 = vmatmul.mubr.msk.bf16.vlgmr.msra.gmra.mrb[32].mxu1 %vm773_vm4, %v3601_v37  ;;  %v2930_v37 = vld [vmem:[%s4585_s8 + $0xf8] sm:$0xff] }
 0xb29   :  { %v3376_v63 = vpop.f32.mrb[32].mxu1 }
 0xb2a   :  { %v1961_v17 = vadd.f32 %v3376_v63, %v1895_v61  ;;  %v1952_v42 = vpop.f32.mrb[33].mxu1  ;;  %v2367_v61 = vld [vmem:[%s4586_s12] sm:$0xff]  ;;  %v2370_v63 = vld [vmem:[%s4586_s12 + $0x18] sm:$0xff] }
 0xb2b   :  { %v1953_v0 = vadd.f32 %v1952_v42, %v1885_v49  ;;  %v3377_v20 = vpop.f32.mrb[34].mxu1  ;;  %v2929_v49 = vld [vmem:[%s4585_s8 + $0xf0] sm:$0xff]  ;;  %v2372_v42 = vld [vmem:[%s4586_s12 + $0x28] sm:$0xff] }
 0xb2c   :  { %v1969_v21 = vadd.f32 %v1961_v17, %v4187_v46  ;;  %v1964_v1 = vadd.f32 %v3377_v20, %v1900_v18  ;;  %v1955_v43 = vpop.f32.mrb[35].mxu1  ;;  %v2900_v46 = vld [vmem:[%s4578_s6 + $0xe8] sm:$0xff]  ;;  %v2369_v17 = vld [vmem:[%s4586_s12 + $0x10] sm:$0xff]  ;;  %v2371_v18 = vld [vmem:[%s4586_s12 + $0x20] sm:$0xff] }
 0xb2d   :  { %v1967_v44 = vadd.f32 %v1953_v0, %v4191_v48  ;;  %v1956_v2 = vadd.f32 %v1955_v43, %v1890_v60  ;;  %v2902_v48 = vld [vmem:[%s4578_s6 + $0xf8] sm:$0xff]  ;;  %v2368_v60 = vld [vmem:[%s4586_s12 + $0x8] sm:$0xff]  ;;  %v2373_v20 = vld [vmem:[%s4586_s12 + $0x30] sm:$0xff] }
 0xb2e   :  { %v1970_v45 = vadd.f32 %v1964_v1, %v4189_v47  ;;  %v1973_v38 = vmul.f32 0.999995, %v1969_v21  ;;  %v2899_v47 = vld [vmem:[%s4578_s6 + $0xe0] sm:$0xff]  ;;  %v2374_v0 = vld [vmem:[%s4586_s12 + $0x38] sm:$0xff]  ;;  %v2376_v21 = vld [vmem:[%s4586_s12 + $0x48] sm:$0xff] }
 0xb2f   :  { %v1968_v3 = vadd.f32 %v1956_v2, %v4193_v58  ;;  %v1971_v39 = vmul.f32 0.999995, %v1967_v44  ;;  %v3602_v58 = vld [vmem:[%s4579_s5 + $0x60] sm:$0xff]   ;;  %v2378_v43 = vld [vmem:[%s4586_s12 + $0x58] sm:$0xff]  ;;  %v2377_v44 = vld [vmem:[%s4586_s12 + $0x50] sm:$0xff] }
 0xb30   :  { %v1974_v59 = vmul.f32 0.999995, %v1970_v45  ;;  %3386 = vmatprep.mubr.msk.bf16.mxu0 %vm271_vm2, %v3602_v58  ;;  %v2375_v1 = vld [vmem:[%s4586_s12 + $0x40] sm:$0xff]  ;;  %v2380_v2 = vld [vmem:[%s4586_s12 + $0x68] sm:$0xff] }
 0xb31   :  { %v1972_v40 = vmul.f32 0.999995, %v1968_v3  ;;  %v2379_v45 = vld [vmem:[%s4586_s12 + $0x60] sm:$0xff]  ;;  %v2382_v3 = vld [vmem:[%s4586_s12 + $0x78] sm:$0xff] }
 0xb32   :  { %v3549_v41 = vpack.i.bf16 %v1974_v59, %v1973_v38  ;;  %v4309_v62 = vpack.c.bf16 %v1974_v59, %v1973_v38  ;;  %v2381_v38 = vld [vmem:[%s4586_s12 + $0x70] sm:$0xff]  ;;  %v2651_v59 = vld [vmem:[%s4587_s14 + $0x8] sm:$0xf] }
 0xb33   :  { %v3544_v4 = vpack.i.bf16 %v1972_v40, %v1971_v39  ;;  %v4311_v5 = vpack.c.bf16 %v1972_v40, %v1971_v39  ;;  %v2650_v40 = vld [vmem:[%s4587_s14] sm:$0xff] }
 0xb34   :  { %3550 = vrot.lane.b32.xlu1 %v3549_v41, %s3725_s22 }
 0xb35   :  { %3545 = vrot.lane.b32.xlu0 %v3544_v4, %s3725_s22 }
 0xb38   :  { %2032 = vperm.xlu1 %3513, %v2900_v46  }
 0xb39   :  { %2027 = vperm.xlu0 %3512, %v2899_v47  }
 0xb3c   :  { %2042 = vperm.xlu1 %3513, %v2902_v48  }
 0xb3d   :  { %2037 = vperm.xlu0 %3512, %v2901_v6  }
 0xb40   :  { %2012 = vperm.xlu1 %3513, %v2896_v7   ;;  %v3603_v7 = vld [vmem:[%s4579_s5 + $0x68] sm:$0xff]  }
 0xb41   :  { %2007 = vperm.xlu0 %3512, %v2895_v8   ;;  %v3604_v8 = vld [vmem:[%s4579_s5 + $0x70] sm:$0xff]  }
 0xb44   :  { %2022 = vperm.xlu1 %3513, %v2898_v9   ;;  %v3606_v9 = vld [vmem:[%s4582_s7 + $0x60] sm:$0xff]  }
 0xb45   :  { %2017 = vperm.xlu0 %3512, %v2897_v10  }
 0xb48   :  { %406 = vperm.xlu1 %3513, %v392_v11  }
 0xb49   :  { %401 = vperm.xlu0 %3512, %v391_v12  }
 0xb4c   :  { %1063 = vperm.xlu1 %3513, %v2796_v13  }
 0xb4d   :  { %1058 = vperm.xlu0 %3512, %v2795_v14  }
 0xb50   :  { %1632 = vperm.xlu1 %3513, %v2860_v15  }
 0xb51   :  { %1627 = vperm.xlu0 %3512, %v2859_v16  }
 0xb54   :  { %416 = vperm.xlu1 %3513, %v394_v19  }
 0xb55   :  { %411 = vperm.xlu0 %3512, %v393_v22  }
 0xb58   :  { %1073 = vperm.xlu1 %3513, %v2798_v23  }
 0xb59   :  { %1068 = vperm.xlu0 %3512, %v2797_v24  }
 0xb5c   :  { %2201 = vperm.xlu1 %3513, %v2924_v25  }
 0xb5d   :  { %2196 = vperm.xlu0 %3512, %v2923_v26  }
 0xb60   :  { %1642 = vperm.xlu1 %3513, %v2862_v27  }
 0xb61   :  { %1637 = vperm.xlu0 %3512, %v2861_v28  }
 0xb64   :  { %426 = vperm.xlu1 %3513, %v396_v29  }
 0xb65   :  { %421 = vperm.xlu0 %3512, %v395_v30  }
 0xb68   :  { %1083 = vperm.xlu1 %3513, %v2800_v31  }
 0xb69   :  { %1078 = vperm.xlu0 %3512, %v2799_v50  }
 0xb6c   :  { %2211 = vperm.xlu1 %3513, %v2926_v51  }
 0xb6d   :  { %2206 = vperm.xlu0 %3512, %v2925_v52  }
 0xb70   :  { %1652 = vperm.xlu1 %3513, %v2864_v53  }
 0xb71   :  { %1647 = vperm.xlu0 %3512, %v2863_v54  }
 0xb74   :  { %436 = vperm.xlu1 %3513, %v398_v55  }
 0xb75   :  { %431 = vperm.xlu0 %3512, %v397_v32  }
 0xb78   :  { %1093 = vperm.xlu1 %3513, %v2802_v56  }
 0xb79   :  { %1088 = vperm.xlu0 %3512, %v2801_v33  }
 0xb7c   :  { %2221 = vperm.xlu1 %3513, %v2928_v57  }
 0xb7d   :  { %2216 = vperm.xlu0 %3512, %v2927_v34  }
 0xb80   :  { %1662 = vperm.xlu1 %3513, %v2866_v35  }
 0xb81   :  { %1657 = vperm.xlu0 %3512, %v2865_v36  }
 0xb84   :  { %2231 = vperm.xlu1 %3513, %v2930_v37  }
 0xb85   :  { %2226 = vperm.xlu0 %3512, %v2929_v49  }
 0xb88   :  { %2390 = vperm.xlu1 %3513, %v2368_v60  }
 0xb89   :  { %2385 = vperm.xlu0 %3512, %v2367_v61  }
 0xb8c   :  { %2400 = vperm.xlu1 %3513, %v2370_v63  }
 0xb8d   :  { %2395 = vperm.xlu0 %3512, %v2369_v17  }
 0xb90   :  { %2410 = vperm.xlu1 %3513, %v2372_v42  }
 0xb91   :  { %2405 = vperm.xlu0 %3512, %v2371_v18  }
 0xb94   :  { %2420 = vperm.xlu1 %3513, %v2374_v0  }
 0xb95   :  { %2415 = vperm.xlu0 %3512, %v2373_v20  }
 0xb98   :  { %2430 = vperm.xlu1 %3513, %v2376_v21  }
 0xb99   :  { %2425 = vperm.xlu0 %3512, %v2375_v1  }
 0xb9c   :  { %2440 = vperm.xlu1 %3513, %v2378_v43  }
 0xb9d   :  { %2435 = vperm.xlu0 %3512, %v2377_v44  }
 0xba0   :  { %2450 = vperm.xlu1 %3513, %v2380_v2  }
 0xba1   :  { %2445 = vperm.xlu0 %3512, %v2379_v45  }
 0xba4   :  { %2460 = vperm.xlu1 %3513, %v2382_v3  }
 0xba5   :  { %2455 = vperm.xlu0 %3512, %v2381_v38  }
 0xba6   :  { %v3551_v39 = vpop.permute.xlu1 %3550 }
 0xba7   :  { %v3546_v41 = vpop.permute.xlu0 %3545  ;;  %v3553_v4 = vunpack.i.h.bf16 %v3551_v39  ;;  %v3552_v46 = vunpack.i.l.bf16 %v3551_v39  ;;  %v3608_v39 = vld [vmem:[%s4582_s7 + $0x70] sm:$0xff]  }
 0xba8   :  { %v3548_v47 = vunpack.i.h.bf16 %v3546_v41  ;;  %v3547_v48 = vunpack.i.l.bf16 %v3546_v41  ;;  %2659 = vperm.xlu1 %3513, %v2651_v59   ;;  %v3607_v59 = vld [vmem:[%s4582_s7 + $0x68] sm:$0xff]   ;;  %v3610_v41 = vld [vmem:[%s4588_s11] sm:$0xff]  }
 0xba9   :  { %2654 = vperm.xlu0 %3512, %v2650_v40   ;;  %v1984_v6 = vpack.c.bf16 %v3553_v4, %v3552_v46  ;;  %v3609_v40 = vld [vmem:[%s4582_s7 + $0x78] sm:$0xff]   ;;  %3414 = vmatprep.mubr.msk.bf16.mxu1 %vm271_vm2, %v3610_v41 }
 0xbaa   :  { %v1983_v58 = vpack.c.bf16 %v3548_v47, %v3547_v48 }
 0xbac   :  { %3378 = vmatprep.subr.bf16.mxu0 %v1983_v58 }
 0xbad   :  { %3379 = vmatpush3.bf16.msra.mxu0 %v1983_v58 }
 0xbae   :  { %3380 = vmatprep.subr.bf16.mxu0 %v1984_v6 }
 0xbb1   :  { %3381 = vmatpush3.bf16.msra.mxu0 %v1984_v6 }
 0xbb2   :  { %3382 = vmatprep.subr.bf16.mxu0 %v4311_v5 }
 0xbb5   :  { %3383 = vmatpush3.bf16.msra.mxu0 %v4311_v5  ;;  %v3605_v5 = vld [vmem:[%s4579_s5 + $0x78] sm:$0xff]  }
 0xbb6   :  { %3384 = vmatprep.subr.bf16.mxu0 %v4309_v62 }
 0xbb7   :  { %v2033_v11 = vpop.permute.xlu1 %2032 }
 0xbb9   :  { %3385 = vmatpush3.bf16.msra.mxu0 %v4309_v62  ;;  %v2028_v62 = vpop.permute.xlu0 %2027 }
 0xbbb   :  { %v2043_v16 = vpop.permute.xlu1 %2042 }
 0xbbc   :  { %3387 = vmatmul.mubr.msk.bf16.vlgmr.msra.gmra.mrb[36].mxu0 %vm271_vm2, %v3603_v7 }
 0xbbd   :  { %3390 = vmatprep.mubr.msk.bf16.mxu0 %vm271_vm2, %v3604_v8  ;;  %v2038_v15 = vpop.permute.xlu0 %2037 }
 0xbbf   :  { %v2013_v50 = vpop.permute.xlu1 %2012 }
 0xbc1   :  { %v2008_v26 = vpop.permute.xlu0 %2007 }
 0xbc3   :  { %v2023_v55 = vpop.permute.xlu1 %2022 }
 0xbc4   :  { %3391 = vmatmul.mubr.msk.bf16.gmra.mrb[40].mxu0 %vm271_vm2, %v3605_v5 }
 0xbc5   :  { %3398 = vmatprep.mubr.msk.bf16.mxu0 %vm459_vm3, %v3606_v9  ;;  %v2018_v53 = vpop.permute.xlu0 %2017 }
 0xbc7   :  { %v407_v46 = vpop.permute.xlu1 %406 }
 0xbc9   :  { %v402_v4 = vpop.permute.xlu0 %401 }
 0xbcb   :  { %v1064_v48 = vpop.permute.xlu1 %1063 }
 0xbcd   :  { %v1059_v47 = vpop.permute.xlu0 %1058 }
 0xbcf   :  { %v1633_v6 = vpop.permute.xlu1 %1632 }
 0xbd1   :  { %v1628_v58 = vpop.permute.xlu0 %1627 }
 0xbd3   :  { %v417_v8 = vpop.permute.xlu1 %416 }
 0xbd5   :  { %v412_v7 = vpop.permute.xlu0 %411 }
 0xbd7   :  { %v1074_v9 = vpop.permute.xlu1 %1073 }
 0xbd9   :  { %v1069_v5 = vpop.permute.xlu0 %1068 }
 0xc8f   :  { %v3388_v10 = vpop.f32.mrb[36].mxu0 }
 0xc90   :  { %v2111_v12 = vpop.f32.mrb[37].mxu0  ;;  %v2120_v54 = vadd.f32 %v3388_v10, %v2018_v53  ;;  %v2202_v10 = vpop.permute.xlu1 %2201  ;;  %v3462_v53 = vadd.f32 %v1064_v48, %v407_v46 }
 0xc91   :  { %v3389_v13 = vpop.f32.mrb[38].mxu0  ;;  %v2112_v32 = vadd.f32 %v2111_v12, %v2008_v26 }
 0xc92   :  { %v2114_v14 = vpop.f32.mrb[39].mxu0  ;;  %v2123_v56 = vadd.f32 %v3389_v13, %v2023_v55 }
 0xc93   :  { %v2115_v33 = vadd.f32 %v2114_v14, %v2013_v50  ;;  %v3454_v50 = vadd.f32 %v1059_v47, %v402_v4 }
 0xc94   :  { %v1643_v12 = vpop.permute.xlu1 %1642 }
 0xc97   :  { %v3392_v19 = vpop.f32.mrb[40].mxu0 }
 0xc98   :  { %v2136_v22 = vadd.f32 %v3392_v19, %v2038_v15  ;;  %v2127_v23 = vpop.f32.mrb[41].mxu0  ;;  %v427_v14 = vpop.permute.xlu1 %426 }
 0xc99   :  { %v2128_v24 = vadd.f32 %v2127_v23, %v2028_v62  ;;  %v3393_v25 = vpop.f32.mrb[42].mxu0  ;;  %v2197_v62 = vpop.permute.xlu0 %2196 }
 0xc9a   :  { %v2913_v27 = vmul.f32 -1.442695, %v2136_v22  ;;  %v2139_v28 = vadd.f32 %v3393_v25, %v2043_v16  ;;  %v2130_v29 = vpop.f32.mrb[43].mxu0 }
 0xc9b   :  { %v2911_v30 = vmul.f32 -1.442695, %v2128_v24  ;;  %v2131_v31 = vadd.f32 %v2130_v29, %v2033_v11 }
 0xc9c   :  { %3691 = vpow2.f32 %v2913_v27  ;;  %v2914_v51 = vmul.f32 -1.442695, %v2139_v28  ;;  %v1084_v16 = vpop.permute.xlu1 %1083 }
 0xc9d   :  { %3693 = vpow2.f32 %v2911_v30  ;;  %v2912_v52 = vmul.f32 -1.442695, %v2131_v31  ;;  %v1638_v11 = vpop.permute.xlu0 %1637  ;;  %v3450_v31 = vadd.f32 %v1069_v5, %v412_v7 }
 0xc9e   :  { %3695 = vpow2.f32 %v2914_v51  ;;  %v3458_v51 = vadd.f32 %v1074_v9, %v417_v8 }
 0xc9f   :  { %3697 = vpow2.f32 %v2912_v52  ;;  %v3451_v52 = vadd.f32 %v3450_v31, %v1638_v11 }
 0xca0   :  { %3699 = vtanh.f32 %v2120_v54  ;;  %v2212_v22 = vpop.permute.xlu1 %2211  ;;  %v3455_v54 = vadd.f32 %v3454_v50, %v1628_v58 }
 0xca1   :  { %3701 = vtanh.f32 %v2112_v32  ;;  %v422_v13 = vpop.permute.xlu0 %421  ;;  %v3459_v32 = vadd.f32 %v3458_v51, %v1643_v12 }
 0xca2   :  { %3703 = vtanh.f32 %v2123_v56 }
 0xca3   :  { %3705 = vtanh.f32 %v2115_v33  ;;  %v3463_v33 = vadd.f32 %v3462_v53, %v1633_v6 }
 0xca4   :  { %v1653_v24 = vpop.permute.xlu1 %1652 }
 0xca5   :  { %v1079_v15 = vpop.permute.xlu0 %1078 }
 0xca6   :  { %v3692_v57 = vpop.eup %3691 }
 0xca7   :  { %v3694_v34 = vpop.eup %3693  ;;  %v2160_v35 = vadd.f32 1.0, %v3692_v57  ;;  %v3456_v57 = vadd.f32 %v3455_v54, %v2197_v62 }
 0xca8   :  { %v3696_v36 = vpop.eup %3695  ;;  %v2158_v37 = vadd.f32 1.0, %v3694_v34  ;;  %v437_v26 = vpop.permute.xlu1 %436 }
 0xca9   :  { %v3698_v49 = vpop.eup %3697  ;;  %3707 = vrcp.f32 %v2160_v35  ;;  %v2161_v60 = vadd.f32 1.0, %v3696_v36  ;;  %v2207_v19 = vpop.permute.xlu0 %2206  ;;  %v3460_v36 = vadd.f32 %v3459_v32, %v2212_v22 }
 0xcaa   :  { %3709 = vrcp.f32 %v2158_v37  ;;  %v2159_v61 = vadd.f32 1.0, %v3698_v49  ;;  %v3700_v63 = vpop.eup %3699  ;;  %v3452_v56 = vadd.f32 %v3451_v52, %v2207_v19 }
 0xcab   :  { %3711 = vrcp.f32 %v2161_v60  ;;  %v3702_v17 = vpop.eup %3701  ;;  %v3464_v60 = vadd.f32 %v3463_v33, %v2202_v10 }
 0xcac   :  { %3713 = vrcp.f32 %v2159_v61  ;;  %v3704_v42 = vpop.eup %3703  ;;  %v1094_v28 = vpop.permute.xlu1 %1093 }
 0xcad   :  { %v3706_v18 = vpop.eup %3705  ;;  %v1648_v23 = vpop.permute.xlu0 %1647 }
 0xcb0   :  { %v2222_v30 = vpop.permute.xlu1 %2221 }
 0xcb1   :  { %v432_v25 = vpop.permute.xlu0 %431 }
 0xcb3   :  { %v3708_v0 = vpop.eup %3707 }
 0xcb4   :  { %v3710_v20 = vpop.eup %3709  ;;  %v2172_v21 = vmul.f32 %v3708_v0, %v3700_v63  ;;  %v1663_v34 = vpop.permute.xlu1 %1662  ;;  %v3470_v0 = vadd.f32 %v1079_v15, %v422_v13 }
 0xcb5   :  { %v3712_v1 = vpop.eup %3711  ;;  %v2170_v43 = vmul.f32 %v3710_v20, %v3702_v17  ;;  %v1089_v27 = vpop.permute.xlu0 %1088 }
 0xcb6   :  { %v3714_v44 = vpop.eup %3713  ;;  %v2173_v2 = vmul.f32 %v3712_v1, %v3704_v42  ;;  %v3466_v17 = vadd.f32 %v1089_v27, %v432_v25  ;;  %v3474_v1 = vadd.f32 %v1094_v28, %v437_v26  ;;  %v3613_v25 = vld [vmem:[%s4588_s11 + $0x18] sm:$0xff]   ;;  %v3614_v26 = vld [vmem:[%s4588_s11 + $0x20] sm:$0xff]   ;;  %v3615_v27 = vld [vmem:[%s4588_s11 + $0x28] sm:$0xff]  }
 0xcb7   :  { %v2171_v45 = vmul.f32 %v3714_v44, %v3706_v18  ;;  %v3616_v28 = vld [vmem:[%s4588_s11 + $0x30] sm:$0xff]  }
 0xcb8   :  { %v2175_v3 = vpack.c.bf16 %v2173_v2, %v2172_v21 }
 0xcb9   :  { %v2174_v38 = vpack.c.bf16 %v2171_v45, %v2170_v43  ;;  %v2217_v29 = vpop.permute.xlu0 %2216  ;;  %v3478_v45 = vadd.f32 %v1084_v16, %v427_v14 }
 0xcbb   :  { %3394 = vmatprep.subr.bf16.mxu0 %v2174_v38  ;;  %v3479_v46 = vadd.f32 %v3478_v45, %v1653_v24  ;;  %v3612_v24 = vld [vmem:[%s4588_s11 + $0x10] sm:$0xff]  }
 0xcbc   :  { %3395 = vmatpush3.bf16.msra.mxu0 %v2174_v38  ;;  %v2232_v38 = vpop.permute.xlu1 %2231 }
 0xcbd   :  { %3396 = vmatprep.subr.bf16.mxu0 %v2175_v3  ;;  %v1658_v55 = vpop.permute.xlu0 %1657  ;;  %v3480_v5 = vadd.f32 %v3479_v46, %v2222_v30  ;;  %v3726_v30 = vmov 0.0  }
 0xcbe   :  { %v3467_v43 = vadd.f32 %v3466_v17, %v1658_v55 }
 0xcc0   :  { %3397 = vmatpush3.bf16.msra.mxu0 %v2175_v3  ;;  %v3471_v3 = vadd.f32 %v3470_v0, %v1648_v23  ;;  %v3611_v23 = vld [vmem:[%s4588_s11 + $0x8] sm:$0xff]   ;;  %v2391_v50 = vpop.permute.xlu1 %2390 }
 0xcc1   :  { %v2227_v20 = vpop.permute.xlu0 %2226 }
 0xcc2   :  { %v3468_v41 = vadd.f32 %v3467_v43, %v2227_v20  ;;  %v3472_v47 = vadd.f32 %v3471_v3, %v2217_v29  ;;  %v3617_v29 = vld [vmem:[%s4588_s11 + $0x38] sm:$0xff]  }
 0xcc3   :  { %3399 = vmatmul.mubr.msk.bf16.vlgmr.msra.gmra.mrb[4].mxu0 %vm459_vm3, %v3607_v59 }
 0xcc4   :  { %3402 = vmatprep.mubr.msk.bf16.mxu0 %vm459_vm3, %v3608_v39  ;;  %v2401_v52 = vpop.permute.xlu1 %2400 }
 0xcc5   :  { %v2386_v31 = vpop.permute.xlu0 %2385 }
 0xcc8   :  { %v2411_v54 = vpop.permute.xlu1 %2410 }
 0xcc9   :  { %v2396_v51 = vpop.permute.xlu0 %2395 }
 0xccb   :  { %3403 = vmatmul.mubr.msk.bf16.gmra.mrb[8].mxu0 %vm459_vm3, %v3609_v40  ;;  %v3475_v40 = vadd.f32 %v3474_v1, %v1663_v34 }
 0xccd   :  { %v3476_v6 = vadd.f32 %v3475_v40, %v2232_v38  ;;  %v2406_v53 = vpop.permute.xlu0 %2405 }
 0xcd1   :  { %v2416_v55 = vpop.permute.xlu0 %2415 }
 0xd96   :  { %v3400_v35 = vpop.f32.mrb[4].mxu0 }
 0xd97   :  { %v3453_v37 = vadd.f32 %v3452_v56, %v3400_v35  ;;  %v2300_v49 = vpop.f32.mrb[5].mxu0 }
 0xd98   :  { %v3457_v61 = vadd.f32 %v3456_v57, %v2300_v49  ;;  %v3401_v63 = vpop.f32.mrb[6].mxu0  ;;  %v2421_v57 = vpop.permute.xlu1 %2420 }
 0xd99   :  { %v3461_v42 = vadd.f32 %v3460_v36, %v3401_v63  ;;  %v2303_v18 = vpop.f32.mrb[7].mxu0  ;;  %v2341_v44 = vmax.f32 %v3453_v37, 0.0  ;;  %v2426_v63 = vpop.permute.xlu0 %2425 }
 0xd9a   :  { %v3465_v21 = vadd.f32 %v3464_v60, %v2303_v18  ;;  %v2339_v59 = vmax.f32 %v3457_v61, 0.0 }
 0xd9b   :  { %v2342_v2 = vmax.f32 %v3461_v42, 0.0 }
 0xd9c   :  { %v2340_v39 = vmax.f32 %v3465_v21, 0.0  ;;  %v2431_v0 = vpop.permute.xlu1 %2430 }
 0xd9d   :  { %v2348_v4 = vpack.c.bf16 %v2342_v2, %v2341_v44  ;;  %v2436_v38 = vpop.permute.xlu0 %2435 }
 0xd9e   :  { %v2347_v48 = vpack.c.bf16 %v2340_v39, %v2339_v59  ;;  %v3404_v58 = vpop.f32.mrb[8].mxu0 }
 0xd9f   :  { %v3469_v7 = vadd.f32 %v3468_v41, %v3404_v58  ;;  %v2316_v8 = vpop.f32.mrb[9].mxu0 }
 0xda0   :  { %v3473_v9 = vadd.f32 %v3472_v47, %v2316_v8  ;;  %v3405_v62 = vpop.f32.mrb[10].mxu0  ;;  %3406 = vmatprep.subr.bf16.mxu1 %v2347_v48  ;;  %v2441_v41 = vpop.permute.xlu1 %2440 }
 0xda1   :  { %v3477_v10 = vadd.f32 %v3476_v6, %v3405_v62  ;;  %v2319_v11 = vpop.f32.mrb[11].mxu0  ;;  %3407 = vmatpush3.bf16.msra.mxu1 %v2347_v48  ;;  %v2345_v13 = vmax.f32 %v3469_v7, 0.0  ;;  %v2446_v8 = vpop.permute.xlu0 %2445 }
 0xda2   :  { %v3481_v12 = vadd.f32 %v3480_v5, %v2319_v11  ;;  %3408 = vmatprep.subr.bf16.mxu1 %v2348_v4  ;;  %v2343_v15 = vmax.f32 %v3473_v9, 0.0 }
 0xda3   :  { %v2346_v14 = vmax.f32 %v3477_v10, 0.0 }
 0xda4   :  { %v2344_v16 = vmax.f32 %v3481_v12, 0.0  ;;  %v2451_v11 = vpop.permute.xlu1 %2450 }
 0xda5   :  { %v2350_v19 = vpack.c.bf16 %v2346_v14, %v2345_v13  ;;  %3409 = vmatpush3.bf16.msra.mxu1 %v2348_v4 }
 0xda6   :  { %v2349_v22 = vpack.c.bf16 %v2344_v16, %v2343_v15 }
 0xda8   :  { %3410 = vmatprep.subr.bf16.mxu1 %v2349_v22 }
 0xda9   :  { %3411 = vmatpush3.bf16.msra.mxu1 %v2349_v22  ;;  %v2456_v22 = vpop.permute.xlu0 %2455 }
 0xdaa   :  { %3412 = vmatprep.subr.bf16.mxu1 %v2350_v19 }
 0xdad   :  { %3413 = vmatpush3.bf16.msra.mxu1 %v2350_v19 }
 0xdae   :  { %3430 = vmatprep.subr.bf16.mxu1 %v3726_v30 }
 0xdb0   :  { %3415 = vmatmul.mubr.msk.bf16.vlgmr.msra.gmra.mrb[36].mxu1 %vm271_vm2, %v3611_v23 }
 0xdb1   :  { %3418 = vmatprep.mubr.msk.bf16.mxu1 %vm271_vm2, %v3612_v24 }
 0xdb8   :  { %3419 = vmatmul.mubr.msk.bf16.gmra.mrb[40].mxu1 %vm271_vm2, %v3613_v25 }
 0xdb9   :  { %3422 = vmatprep.mubr.msk.bf16.mxu1 %vm271_vm2, %v3614_v26 }
 0xdc0   :  { %3423 = vmatmul.mubr.msk.bf16.gmra.mrb[44].mxu1 %vm271_vm2, %v3615_v27  ;;  %v2461_v27 = vpop.permute.xlu1 %2460 }
 0xdc1   :  { %3426 = vmatprep.mubr.msk.bf16.mxu1 %vm271_vm2, %v3616_v28 }
 0xdc8   :  { %3427 = vmatmul.mubr.msk.bf16.gmra.mrb[48].mxu1 %vm271_vm2, %v3617_v29 }
 0xdc9   :  { %3446 = vmatprep.mubr.msk.bf16.mxu1 %vm3727_vm5, %v3726_v30 }
 0xe83   :  { %v3416_v32 = vpop.f32.mrb[36].mxu1 }
 0xe84   :  { %v2570_v56 = vadd.f32 %v3416_v32, %v2396_v51  ;;  %v2561_v33 = vpop.f32.mrb[37].mxu1 }
 0xe85   :  { %v2562_v34 = vadd.f32 %v2561_v33, %v2386_v31  ;;  %v3417_v35 = vpop.f32.mrb[38].mxu1  ;;  %v3618_v33 = vld [vmem:[%s4589_s13] sm:$0x3f]  }
 0xe86   :  { %v2573_v36 = vadd.f32 %v3417_v35, %v2401_v52  ;;  %v2564_v37 = vpop.f32.mrb[39].mxu1  ;;  %v2626_v60 = vmax.f32 %v2570_v56, 0.0 }
 0xe87   :  { %v2565_v49 = vadd.f32 %v2564_v37, %v2391_v50  ;;  %v2624_v17 = vmax.f32 %v2562_v34, 0.0  ;;  %v2660_v37 = vpop.permute.xlu1 %2659 }
 0xe88   :  { %v2627_v61 = vmax.f32 %v2573_v36, 0.0 }
 0xe89   :  { %v2625_v42 = vmax.f32 %v2565_v49, 0.0 }
 0xe8a   :  { %v2643_v18 = vpack.c.bf16 %v2627_v61, %v2626_v60 }
 0xe8b   :  { %v2642_v20 = vpack.c.bf16 %v2625_v42, %v2624_v17  ;;  %v3420_v21 = vpop.f32.mrb[40].mxu1 }
 0xe8c   :  { %v2586_v1 = vadd.f32 %v3420_v21, %v2416_v55  ;;  %v2577_v43 = vpop.f32.mrb[41].mxu1 }
 0xe8d   :  { %v2578_v44 = vadd.f32 %v2577_v43, %v2406_v53  ;;  %v3421_v2 = vpop.f32.mrb[42].mxu1  ;;  %3431 = vmatpush3.bf16.msra.mxu1 %v2642_v20 }
 0xe8e   :  { %v2589_v45 = vadd.f32 %v3421_v2, %v2421_v57  ;;  %v2580_v3 = vpop.f32.mrb[43].mxu1  ;;  %3432 = vmatprep.subr.bf16.mxu1 %v3726_v30  ;;  %v2630_v39 = vmax.f32 %v2586_v1, 0.0  ;;  %v2655_v57 = vpop.permute.xlu0 %2654 }
 0xe8f   :  { %v2581_v59 = vadd.f32 %v2580_v3, %v2411_v54  ;;  %v2628_v4 = vmax.f32 %v2578_v44, 0.0 }
 0xe90   :  { %v2631_v40 = vmax.f32 %v2589_v45, 0.0 }
 0xe91   :  { %v2629_v46 = vmax.f32 %v2581_v59, 0.0  ;;  %3433 = vmatpush3.bf16.msra.mxu1 %v2643_v18 }
 0xe92   :  { %v2645_v47 = vpack.c.bf16 %v2631_v40, %v2630_v39  ;;  %3434 = vmatprep.subr.bf16.mxu1 %v3726_v30 }
 0xe93   :  { %v2644_v48 = vpack.c.bf16 %v2629_v46, %v2628_v4  ;;  %v3424_v58 = vpop.f32.mrb[44].mxu1 }
 0xe94   :  { %v2602_v6 = vadd.f32 %v3424_v58, %v2436_v38  ;;  %v2593_v7 = vpop.f32.mrb[45].mxu1 }
 0xe95   :  { %v2594_v5 = vadd.f32 %v2593_v7, %v2426_v63  ;;  %v3425_v9 = vpop.f32.mrb[46].mxu1  ;;  %3435 = vmatpush3.bf16.msra.mxu1 %v2644_v48 }
 0xe96   :  { %v2605_v62 = vadd.f32 %v3425_v9, %v2441_v41  ;;  %v2596_v10 = vpop.f32.mrb[47].mxu1  ;;  %3436 = vmatprep.subr.bf16.mxu1 %v3726_v30  ;;  %v2634_v13 = vmax.f32 %v2602_v6, 0.0 }
 0xe97   :  { %v2597_v12 = vadd.f32 %v2596_v10, %v2431_v0  ;;  %v2632_v15 = vmax.f32 %v2594_v5, 0.0 }
 0xe98   :  { %v2635_v14 = vmax.f32 %v2605_v62, 0.0 }
 0xe99   :  { %v2633_v16 = vmax.f32 %v2597_v12, 0.0  ;;  %3437 = vmatpush3.bf16.msra.mxu1 %v2645_v47 }
 0xe9a   :  { %v2647_v19 = vpack.c.bf16 %v2635_v14, %v2634_v13  ;;  %3438 = vmatprep.subr.bf16.mxu1 %v3726_v30 }
 0xe9b   :  { %v2646_v23 = vpack.c.bf16 %v2633_v16, %v2632_v15  ;;  %v3428_v24 = vpop.f32.mrb[48].mxu1 }
 0xe9c   :  { %v2618_v25 = vadd.f32 %v3428_v24, %v2456_v22  ;;  %v2609_v26 = vpop.f32.mrb[49].mxu1 }
 0xe9d   :  { %v2610_v28 = vadd.f32 %v2609_v26, %v2446_v8  ;;  %v3429_v29 = vpop.f32.mrb[50].mxu1  ;;  %3439 = vmatpush3.bf16.msra.mxu1 %v2646_v23 }
 0xe9e   :  { %v2621_v31 = vadd.f32 %v3429_v29, %v2461_v27  ;;  %v2612_v50 = vpop.f32.mrb[51].mxu1  ;;  %3440 = vmatprep.subr.bf16.mxu1 %v3726_v30  ;;  %v2638_v52 = vmax.f32 %v2618_v25, 0.0 }
 0xe9f   :  { %v2613_v51 = vadd.f32 %v2612_v50, %v2451_v11  ;;  %v2636_v54 = vmax.f32 %v2610_v28, 0.0 }
 0xea0   :  { %v2639_v53 = vmax.f32 %v2621_v31, 0.0 }
 0xea1   :  { %v2637_v55 = vmax.f32 %v2613_v51, 0.0  ;;  %3441 = vmatpush3.bf16.msra.mxu1 %v2647_v19 }
 0xea2   :  { %v2649_v32 = vpack.c.bf16 %v2639_v53, %v2638_v52  ;;  %3442 = vmatprep.subr.bf16.mxu1 %v3726_v30 }
 0xea3   :  { %v2648_v56 = vpack.c.bf16 %v2637_v55, %v2636_v54 }
 0xea5   :  { %3443 = vmatpush3.bf16.msra.mxu1 %v2648_v56 }
 0xea6   :  { %3444 = vmatprep.subr.bf16.mxu1 %v3726_v30 }
 0xea9   :  { %3445 = vmatpush3.bf16.msra.mxu1 %v2649_v32 }
 0xeac   :  { %3447 = vmatmul.mubr.bf16.vlgmr.msra.gmra.mrb[52].mxu1 %v3618_v33 }
 0xf7f   :  { %v2702_v34 = vpop.f32.mrb[52].mxu1 }
 0xf80   :  { %v2703_v35 = vadd.f32 %v2702_v34, %v2655_v57  ;;  %v3448_v36 = vpop.f32.mrb[53].mxu1 }
 0xf81   :  { %v2705_v49 = vpop.f32.mrb[54].mxu1 }
 0xf82   :  { %2709 = vst [vmem:[%s4590_s15] sm:$0xff] %v2703_v35  ;;  %v2706_v60 = vadd.f32 %v2705_v49, %v2660_v37  ;;  %v3449_v61 = vpop.f32.mrb[55].mxu1 }
 0xf84   :  { %2710 = vst [vmem:[%s4590_s15 + $0x8] sm:$0xf] %v2706_v60 }

</bundles_post_ra>
